<compile_context>
chip_gen: v7x
topology: tpu7x:2x2x1
jax: 0.10.0
libtpu: 0.0.40
codegen_flags: <defaults>
</compile_context>

<pallas_src>
import functools
import math

import jax
import jax.numpy as jnp
from jax import lax
from jax.experimental import pallas as pl
from jax.experimental.pallas import tpu as pltpu


def _flash_sa_kernel(*refs, mode, seq_len, s_pad, tile):
    """One (batch, q_tile, kv_tile) grid step of fused flash self-attention.

    Inputs are the already-projected (and, for Q, pre-scaled) Q/K/V tiles; the kernel
    fuses online-softmax attention with the output projection, stored transposed so
    the minor store dim (tile) is lane-dense.
    """
    if mode == "mask":
        (q_ref, k_ref, v_ref, mask_ref, wo_t_ref, bo_ref,
         out_ref, m_s, l_s, acc_s) = refs
    else:
        (q_ref, k_ref, v_ref, wo_t_ref, bo_ref,
         out_ref, m_s, l_s, acc_s) = refs
        mask_ref = None

    qi = pl.program_id(1)
    ki = pl.program_id(2)
    nk = pl.num_programs(2)

    @pl.when(ki == 0)
    def _init():
        m_s[...] = jnp.full(m_s.shape, -jnp.inf, dtype=m_s.dtype)
        l_s[...] = jnp.zeros(l_s.shape, l_s.dtype)
        acc_s[...] = jnp.zeros(acc_s.shape, acc_s.dtype)

    def _update():
        q = q_ref[0]                                   # (tile, H) bf16, already scaled
        k = k_ref[0]                                   # (tile, H) bf16
        v = v_ref[0]                                   # (tile, H) bf16

        # Q @ K^T without an explicit transpose (contract axis 1 of both operands).
        s = lax.dot_general(q, k, dimension_numbers=(((1,), (1,)), ((), ())),
                            preferred_element_type=jnp.float32)      # (tile, tile) f32

        if mode == "mask":
            keep = mask_ref[0] != 0                    # int8 compare, no int32 upcast
            s = jnp.where(keep, s, jnp.float32(-1e9))
        elif mode == "causal":
            # In-kernel tril mask.  Padded kv columns (col >= seq_len) are always in
            # the causal future of valid rows, so no extra padding mask is needed.
            row = qi * tile + lax.broadcasted_iota(jnp.int32, s.shape, 0)
            col = ki * tile + lax.broadcasted_iota(jnp.int32, s.shape, 1)
            s = jnp.where(row >= col, s, jnp.float32(-1e9))
        else:
            if s_pad != seq_len:
                # Only the last kv tile can contain padded columns.
                col = ki * tile + lax.broadcasted_iota(jnp.int32, s.shape, 1)
                s = jnp.where(col < seq_len, s, jnp.float32(-1e9))

        # Online (flash) softmax update; m/l live lane-replicated in (tile, 128) f32.
        m_prev = m_s[...]                              # (tile, 128)
        s_max = jnp.max(s, axis=-1, keepdims=True)     # (tile, 1)
        m_new = jnp.maximum(m_prev, s_max)             # (tile, 128)
        alpha = jnp.exp(m_prev - m_new)                # (tile, 128), pure VPU
        p = jnp.exp(s - m_new[:, :1])                  # (tile, tile) f32
        l_s[...] = alpha * l_s[...] + jnp.sum(p, axis=-1, keepdims=True)
        acc_s[...] = alpha[:, :1] * acc_s[...] + jnp.dot(
            p.astype(jnp.bfloat16), v, preferred_element_type=jnp.float32)
        m_s[...] = m_new

    if mode == "causal":
        # kv tiles strictly in the causal future contribute exactly zero: skip compute
        # (pl.when) and the DMA (the wrapper clamps the kv index map so the block index
        # does not change on skipped steps).  Assumes equal q/kv tile sizes (single
        # `tile` parameter).
        pl.when(ki <= qi)(_update)
    else:
        _update()

    @pl.when(ki == nk - 1)
    def _finalize():
        # TODO(synk): training-mode dropout on the attention probabilities is not
        # implemented (eval-mode identity, matching model.eval()).
        l = l_s[...]
        score = (acc_s[...] / l[:, :1]).astype(jnp.bfloat16)          # (tile, H)
        # out^T = Wo^T @ score^T via an A.B^T contraction -> (D_out, tile); the minor
        # store dim is `tile` (multiple of 128), so the store is lane-dense.
        out_t = lax.dot_general(wo_t_ref[...], score,
                                dimension_numbers=(((1,), (1,)), ((), ())),
                                preferred_element_type=jnp.float32)
        out_ref[0] = (out_t + bo_ref[...]).astype(out_ref.dtype)


def _round_up(x, m):
    return ((x + m - 1) // m) * m


def self_attention_v1(x, params, *, num_hiddens, mask=None, causal=False, tile=256):
    """Forward pass of SelfAttentionv1 (eval mode).

    x:    [B, S, D_in] float32.
    mask: optional [B, S, S]; positions where mask == 0 get -1e9 before softmax.
          If a mask is provided it is honored (streamed as int8) even when
          causal=True; causal=True without a mask generates the tril mask in-kernel
          (no mask tensor is streamed from HBM).
    """
    B, S, D_in = x.shape
    H = num_hiddens
    wq, bq, wk, bk, wv, bv, wo, bo = params

    if mask is not None:
        mode = "mask"
    elif causal:
        mode = "causal"
    else:
        mode = "none"

    # Q/K/V projections hoisted out of the kernel: computed once in f32 by XLA (instead
    # of re-projecting K/V for every (q-tile, kv-tile) pair in the flash loop), with the
    # 1/sqrt(H) scale folded into Q, then cast to bf16 MXU operands.
    scale = 1.0 / math.sqrt(H)
    q = ((x @ wq + bq) * scale).astype(jnp.bfloat16)
    k = (x @ wk + bk).astype(jnp.bfloat16)
    v = (x @ wv + bv).astype(jnp.bfloat16)

    s_pad = _round_up(S, tile)
    pad = s_pad - S
    if pad:
        q = jnp.pad(q, ((0, 0), (0, pad), (0, 0)))
        k = jnp.pad(k, ((0, 0), (0, pad), (0, 0)))
        v = jnp.pad(v, ((0, 0), (0, pad), (0, 0)))

    n_tiles = s_pad // tile
    grid = (B, n_tiles, n_tiles)

    wo_t = wo.T.astype(jnp.bfloat16)                   # (D_in, H)
    bo2 = bo.reshape(D_in, 1).astype(jnp.float32)      # (D_in, 1), broadcasts over lanes

    q_map = lambda b, qi, ki: (b, qi, 0)
    if mode == "causal":
        # Skipped (future) kv tiles keep the previous block index -> no DMA issued.
        kv_map = lambda b, qi, ki: (b, jnp.minimum(ki, qi), 0)
    else:
        kv_map = lambda b, qi, ki: (b, ki, 0)
    const2 = lambda b, qi, ki: (0, 0)

    in_specs = [
        pl.BlockSpec((1, tile, H), q_map),     # Q tile (VMEM-resident across kv loop)
        pl.BlockSpec((1, tile, H), kv_map),    # K tile
        pl.BlockSpec((1, tile, H), kv_map),    # V tile
    ]
    inputs = [q, k, v]

    if mode == "mask":
        mask_i8 = (mask != 0).astype(jnp.int8)
        if pad:
            mask_i8 = jnp.pad(mask_i8, ((0, 0), (0, pad), (0, pad)))
        in_specs.append(pl.BlockSpec((1, tile, tile), lambda b, qi, ki: (b, qi, ki)))
        inputs.append(mask_i8)

    # Output projection weights/bias: constant block index -> VMEM-resident.
    in_specs += [pl.BlockSpec((D_in, H), const2), pl.BlockSpec((D_in, 1), const2)]
    inputs += [wo_t, bo2]

    kernel = functools.partial(
        _flash_sa_kernel, mode=mode, seq_len=S, s_pad=s_pad, tile=tile)

    out_t = pl.pallas_call(
        kernel,
        # Transposed output (B, D_in, s_pad): minor dim is `tile`-dense on store.
        out_shape=jax.ShapeDtypeStruct((B, D_in, s_pad), x.dtype),
        grid_spec=pltpu.PrefetchScalarGridSpec(
            num_scalar_prefetch=0,
            grid=grid,
            in_specs=in_specs,
            out_specs=pl.BlockSpec((1, D_in, tile), lambda b, qi, ki: (b, 0, qi)),
            scratch_shapes=[
                pltpu.VMEM((tile, 128), jnp.float32),  # running max m (lane-replicated)
                pltpu.VMEM((tile, 128), jnp.float32),  # running denom l (lane-replicated)
                pltpu.VMEM((tile, H), jnp.float32),    # output accumulator (pre-projection)
            ],
        ),
        compiler_params=pltpu.CompilerParams(
            dimension_semantics=("parallel", "parallel", "arbitrary"),
        ),
    )(*inputs)

    # Layout plumbing only: transpose back and drop seq padding.
    return jnp.transpose(out_t, (0, 2, 1))[:, :S, :]


def init_params(key, input_dims, num_hiddens):
    """Deterministic init mimicking torch.nn.Linear (uniform +-1/sqrt(fan_in)).

    Weights are stored so the forward computes y = x @ W + b.
    """
    keys = jax.random.split(key, 8)

    def linear(kw, kb, fan_in, fan_out):
        bound = 1.0 / math.sqrt(fan_in)
        w = jax.random.uniform(kw, (fan_in, fan_out), jnp.float32, -bound, bound)
        b = jax.random.uniform(kb, (fan_out,), jnp.float32, -bound, bound)
        return w, b

    wq, bq = linear(keys[0], keys[1], input_dims, num_hiddens)
    wk, bk = linear(keys[2], keys[3], input_dims, num_hiddens)
    wv, bv = linear(keys[4], keys[5], input_dims, num_hiddens)
    wo, bo = linear(keys[6], keys[7], num_hiddens, input_dims)
    return (wq, bq, wk, bk, wv, bv, wo, bo)


def reference(x, mask, params, num_hiddens):
    """Pure-JAX f32 reference matching the PyTorch module forward (eval mode)."""
    wq, bq, wk, bk, wv, bv, wo, bo = params
    q = x @ wq + bq
    k = x @ wk + bk
    v = x @ wv + bv
    attn = jnp.einsum("bsh,bth->bst", q, k) / math.sqrt(num_hiddens)
    attn = jnp.where(mask == 0, -1.0e9, attn)
    attn = jax.nn.softmax(attn, axis=-1)
    score = jnp.einsum("bst,bth->bsh", attn, v)
    return score @ wo + bo


if __name__ == "__main__":
    # Matches the PyTorch demo: x = randn(2, 100, 32), causal tril mask.
    B, S, D_in, H = 2, 100, 32, 32

    key = jax.random.PRNGKey(0)
    kx, kp = jax.random.split(key)

    x = jax.random.normal(kx, (B, S, D_in), jnp.float32)
    mask = jnp.tile(jnp.tril(jnp.ones((S, S), jnp.float32))[None], (B, 1, 1))
    params = init_params(kp, D_in, H)

    ref = reference(x, mask, params, H)

    # Path 1 (preferred): causal mask generated in-kernel, no mask HBM stream,
    # future kv tiles neither computed nor DMA'd.
    out_causal = jax.block_until_ready(
        self_attention_v1(x, params, num_hiddens=H, causal=True))

    # Path 2 (general): arbitrary dense mask streamed as int8.
    out_masked = jax.block_until_ready(
        self_attention_v1(x, params, num_hiddens=H, mask=mask))

    assert out_causal.shape == (B, S, D_in)
    assert out_masked.shape == (B, S, D_in)
    # bf16 MXU operands with f32 accumulation -> bf16-appropriate tolerance.
    tol = dict(atol=3e-2, rtol=3e-2)
    assert jnp.allclose(out_causal, ref, **tol), "causal-path mismatch vs reference"
    assert jnp.allclose(out_masked, ref, **tol), "masked-path mismatch vs reference"

    print("KERNEL_OK")
</pallas_src>

<mosaic_0001>
module attributes {stable_mosaic.version = 11 : i64} {
  func.func @_flash_sa_kernel(%arg0: i32, %arg1: i32, %arg2: i32, %arg3: memref<1x256x32xbf16, #tpu.memory_space<vmem>>, %arg4: memref<1x256x32xbf16, #tpu.memory_space<vmem>>, %arg5: memref<1x256x32xbf16, #tpu.memory_space<vmem>>, %arg6: memref<32x32xbf16, #tpu.memory_space<vmem>>, %arg7: memref<32x1xf32, #tpu.memory_space<vmem>>, %arg8: memref<1x32x256xf32, #tpu.memory_space<vmem>>, %arg9: memref<256x128xf32, #tpu.memory_space<vmem>>, %arg10: memref<256x128xf32, #tpu.memory_space<vmem>>, %arg11: memref<256x32xf32, #tpu.memory_space<vmem>>) attributes {dimension_semantics = [#tpu.dimension_semantics<parallel>, #tpu.dimension_semantics<parallel>, #tpu.dimension_semantics<arbitrary>], iteration_bounds = array<i64: 2, 1, 1>, scalar_prefetch = 0 : i64, scratch_operands = 3 : i64, tpu.core_type = #tpu.core_type<tc>, window_params = [{transform_indices = @transform_0, window_bounds = array<i64: 1, 256, 32>}, {transform_indices = @transform_1, window_bounds = array<i64: 1, 256, 32>}, {transform_indices = @transform_2, window_bounds = array<i64: 1, 256, 32>}, {pipeline_mode = #tpu.pipeline_mode<synchronous>, transform_indices = @transform_3, window_bounds = array<i64: 32, 32>}, {pipeline_mode = #tpu.pipeline_mode<synchronous>, transform_indices = @transform_4, window_bounds = array<i64: 32, 1>}, {transform_indices = @transform_5, window_bounds = array<i64: 1, 32, 256>}]} {
    %c0_i32 = arith.constant 0 : i32
    %0 = arith.cmpi eq, %arg2, %c0_i32 : i32
    %1 = arith.extui %0 : i1 to i32
    %c0_i32_0 = arith.constant 0 : i32
    %2 = arith.cmpi ne, %1, %c0_i32_0 : i32
    scf.if %2 {
      %cst = arith.constant 0xFF800000 : f32
      %9 = vector.broadcast %cst : f32 to vector<256x128xf32>
      %c0 = arith.constant 0 : index
      %c0_4 = arith.constant 0 : index
      %10 = vector.load %arg9[%c0, %c0_4] : memref<256x128xf32, #tpu.memory_space<vmem>>, vector<256x128xf32>
      tpu.vector_store %arg9[%c0, %c0_4], %9 {strides = array<i32>} : memref<256x128xf32, #tpu.memory_space<vmem>>, vector<256x128xf32>,
      %cst_5 = arith.constant 0.000000e+00 : f32
      %11 = vector.broadcast %cst_5 : f32 to vector<256x128xf32>
      %c0_6 = arith.constant 0 : index
      %c0_7 = arith.constant 0 : index
      %12 = vector.load %arg10[%c0_6, %c0_7] : memref<256x128xf32, #tpu.memory_space<vmem>>, vector<256x128xf32>
      tpu.vector_store %arg10[%c0_6, %c0_7], %11 {strides = array<i32>} : memref<256x128xf32, #tpu.memory_space<vmem>>, vector<256x128xf32>,
      %cst_8 = arith.constant 0.000000e+00 : f32
      %13 = vector.broadcast %cst_8 : f32 to vector<256x32xf32>
      %c0_9 = arith.constant 0 : index
      %c0_10 = arith.constant 0 : index
      %14 = vector.load %arg11[%c0_9, %c0_10] : memref<256x32xf32, #tpu.memory_space<vmem>>, vector<256x32xf32>
      tpu.vector_store %arg11[%c0_9, %c0_10], %13 {strides = array<i32>} : memref<256x32xf32, #tpu.memory_space<vmem>>, vector<256x32xf32>,
    } else {
    }
    %3 = arith.cmpi sle, %arg2, %arg1 : i32
    %4 = arith.extui %3 : i1 to i32
    %c0_i32_1 = arith.constant 0 : i32
    %5 = arith.cmpi ne, %4, %c0_i32_1 : i32
    scf.if %5 {
      %c0 = arith.constant 0 : index
      %c0_4 = arith.constant 0 : index
      %c0_5 = arith.constant 0 : index
      %9 = vector.load %arg3[%c0, %c0_4, %c0_5] : memref<1x256x32xbf16, #tpu.memory_space<vmem>>, vector<1x256x32xbf16>
      %10 = vector.shape_cast %9 : vector<1x256x32xbf16> to vector<256x32xbf16>
      %c0_6 = arith.constant 0 : index
      %c0_7 = arith.constant 0 : index
      %c0_8 = arith.constant 0 : index
      %11 = vector.load %arg4[%c0_6, %c0_7, %c0_8] : memref<1x256x32xbf16, #tpu.memory_space<vmem>>, vector<1x256x32xbf16>
      %12 = vector.shape_cast %11 : vector<1x256x32xbf16> to vector<256x32xbf16>
      %c0_9 = arith.constant 0 : index
      %c0_10 = arith.constant 0 : index
      %c0_11 = arith.constant 0 : index
      %13 = vector.load %arg5[%c0_9, %c0_10, %c0_11] : memref<1x256x32xbf16, #tpu.memory_space<vmem>>, vector<1x256x32xbf16>
      %14 = vector.shape_cast %13 : vector<1x256x32xbf16> to vector<256x32xbf16>
      %cst = arith.constant dense<0.000000e+00> : vector<256x256xf32>
      %15 = tpu.matmul %10, %12, %cst {dimension_numbers = #tpu.dot_dimension_numbers<[1], [1], [0], [0], [0, 0, 1, 0], [], []>} : vector<256x32xbf16>, vector<256x32xbf16>, vector<256x256xf32> -> vector<256x256xf32>
      %c256_i32 = arith.constant 256 : i32
      %16 = arith.muli %arg1, %c256_i32 : i32
      %17 = tpu.iota {dimensions = array<i32: 0>} : vector<256x256xi32>
      %18 = vector.broadcast %16 : i32 to vector<256x256xi32>
      %19 = arith.addi %18, %17 : vector<256x256xi32>
      %c256_i32_12 = arith.constant 256 : i32
      %20 = arith.muli %arg2, %c256_i32_12 : i32
      %21 = tpu.iota {dimensions = array<i32: 1>} : vector<256x256xi32>
      %22 = vector.broadcast %20 : i32 to vector<256x256xi32>
      %23 = arith.addi %22, %21 : vector<256x256xi32>
      %24 = arith.cmpi sge, %19, %23 : vector<256x256xi32>
      %cst_13 = arith.constant -1.000000e+09 : f32
      %25 = vector.broadcast %cst_13 : f32 to vector<256x256xf32>
      %26 = arith.select %24, %15, %25 : vector<256x256xi1>, vector<256x256xf32>
      %c0_14 = arith.constant 0 : index
      %c0_15 = arith.constant 0 : index
      %27 = vector.load %arg9[%c0_14, %c0_15] : memref<256x128xf32, #tpu.memory_space<vmem>>, vector<256x128xf32>
      %cst_16 = arith.constant dense<0xFF800000> : vector<256xf32>
      %28 = vector.multi_reduction <maximumf>, %26, %cst_16 [1] : vector<256x256xf32> to vector<256xf32>
      %29 = vector.shape_cast %28 : vector<256xf32> to vector<256x1xf32>
      %30 = vector.broadcast %29 : vector<256x1xf32> to vector<256x128xf32>
      %31 = arith.maximumf %27, %30 : vector<256x128xf32>
      %32 = arith.subf %27, %31 : vector<256x128xf32>
      %33 = math.exp %32 : vector<256x128xf32>
      %34 = vector.extract_strided_slice %31 {offsets = [0, 0], sizes = [256, 1], strides = [1, 1]} : vector<256x128xf32> to vector<256x1xf32>
      %35 = vector.broadcast %34 : vector<256x1xf32> to vector<256x256xf32>
      %36 = arith.subf %26, %35 : vector<256x256xf32>
      %37 = math.exp %36 : vector<256x256xf32>
      %c0_17 = arith.constant 0 : index
      %c0_18 = arith.constant 0 : index
      %38 = vector.load %arg10[%c0_17, %c0_18] : memref<256x128xf32, #tpu.memory_space<vmem>>, vector<256x128xf32>
      %39 = arith.mulf %33, %38 : vector<256x128xf32>
      %cst_19 = arith.constant dense<0.000000e+00> : vector<256xf32>
      %40 = vector.multi_reduction <add>, %37, %cst_19 [1] : vector<256x256xf32> to vector<256xf32>
      %41 = vector.shape_cast %40 : vector<256xf32> to vector<256x1xf32>
      %42 = vector.broadcast %41 : vector<256x1xf32> to vector<256x128xf32>
      %43 = arith.addf %39, %42 : vector<256x128xf32>
      %c0_20 = arith.constant 0 : index
      %c0_21 = arith.constant 0 : index
      %44 = vector.load %arg10[%c0_20, %c0_21] : memref<256x128xf32, #tpu.memory_space<vmem>>, vector<256x128xf32>
      tpu.vector_store %arg10[%c0_20, %c0_21], %43 {strides = array<i32>} : memref<256x128xf32, #tpu.memory_space<vmem>>, vector<256x128xf32>,
      %45 = vector.extract_strided_slice %33 {offsets = [0, 0], sizes = [256, 1], strides = [1, 1]} : vector<256x128xf32> to vector<256x1xf32>
      %c0_22 = arith.constant 0 : index
      %c0_23 = arith.constant 0 : index
      %46 = vector.load %arg11[%c0_22, %c0_23] : memref<256x32xf32, #tpu.memory_space<vmem>>, vector<256x32xf32>
      %47 = vector.broadcast %45 : vector<256x1xf32> to vector<256x32xf32>
      %48 = arith.mulf %47, %46 : vector<256x32xf32>
      %49 = arith.truncf %37 : vector<256x256xf32> to vector<256x256xbf16>
      %cst_24 = arith.constant dense<0.000000e+00> : vector<256x32xf32>
      %50 = tpu.matmul %49, %14, %cst_24 {dimension_numbers = #tpu.dot_dimension_numbers<[1], [0], [0], [1], [0, 0, 1, 1], [], []>} : vector<256x256xbf16>, vector<256x32xbf16>, vector<256x32xf32> -> vector<256x32xf32>
      %51 = arith.addf %48, %50 : vector<256x32xf32>
      %c0_25 = arith.constant 0 : index
      %c0_26 = arith.constant 0 : index
      %52 = vector.load %arg11[%c0_25, %c0_26] : memref<256x32xf32, #tpu.memory_space<vmem>>, vector<256x32xf32>
      tpu.vector_store %arg11[%c0_25, %c0_26], %51 {strides = array<i32>} : memref<256x32xf32, #tpu.memory_space<vmem>>, vector<256x32xf32>,
      %c0_27 = arith.constant 0 : index
      %c0_28 = arith.constant 0 : index
      %53 = vector.load %arg9[%c0_27, %c0_28] : memref<256x128xf32, #tpu.memory_space<vmem>>, vector<256x128xf32>
      tpu.vector_store %arg9[%c0_27, %c0_28], %31 {strides = array<i32>} : memref<256x128xf32, #tpu.memory_space<vmem>>, vector<256x128xf32>,
    } else {
    }
    %c0_i32_2 = arith.constant 0 : i32
    %6 = arith.cmpi eq, %arg2, %c0_i32_2 : i32
    %7 = arith.extui %6 : i1 to i32
    %c0_i32_3 = arith.constant 0 : i32
    %8 = arith.cmpi ne, %7, %c0_i32_3 : i32
    scf.if %8 {
      %c0 = arith.constant 0 : index
      %c0_4 = arith.constant 0 : index
      %9 = vector.load %arg10[%c0, %c0_4] : memref<256x128xf32, #tpu.memory_space<vmem>>, vector<256x128xf32>
      %c0_5 = arith.constant 0 : index
      %c0_6 = arith.constant 0 : index
      %10 = vector.load %arg11[%c0_5, %c0_6] : memref<256x32xf32, #tpu.memory_space<vmem>>, vector<256x32xf32>
      %11 = vector.extract_strided_slice %9 {offsets = [0, 0], sizes = [256, 1], strides = [1, 1]} : vector<256x128xf32> to vector<256x1xf32>
      %12 = vector.broadcast %11 : vector<256x1xf32> to vector<256x32xf32>
      %13 = arith.divf %10, %12 : vector<256x32xf32>
      %14 = arith.truncf %13 : vector<256x32xf32> to vector<256x32xbf16>
      %c0_7 = arith.constant 0 : index
      %c0_8 = arith.constant 0 : index
      %15 = vector.load %arg6[%c0_7, %c0_8] : memref<32x32xbf16, #tpu.memory_space<vmem>>, vector<32x32xbf16>
      %cst = arith.constant dense<0.000000e+00> : vector<32x256xf32>
      %16 = tpu.matmul %15, %14, %cst {dimension_numbers = #tpu.dot_dimension_numbers<[1], [1], [0], [0], [0, 0, 1, 0], [], []>} : vector<32x32xbf16>, vector<256x32xbf16>, vector<32x256xf32> -> vector<32x256xf32>
      %c0_9 = arith.constant 0 : index
      %c0_10 = arith.constant 0 : index
      %17 = vector.load %arg7[%c0_9, %c0_10] : memref<32x1xf32, #tpu.memory_space<vmem>>, vector<32x1xf32>
      %18 = vector.broadcast %17 : vector<32x1xf32> to vector<32x256xf32>
      %19 = arith.addf %16, %18 : vector<32x256xf32>
      %c0_11 = arith.constant 0 : index
      %c0_12 = arith.constant 0 : index
      %c0_13 = arith.constant 0 : index
      %20 = vector.load %arg8[%c0_11, %c0_12, %c0_13] : memref<1x32x256xf32, #tpu.memory_space<vmem>>, vector<1x32x256xf32>
      %21 = vector.shape_cast %20 : vector<1x32x256xf32> to vector<32x256xf32>
      %22 = vector.shape_cast %19 : vector<32x256xf32> to vector<1x32x256xf32>
      tpu.vector_store %arg8[%c0_11, %c0_12, %c0_13], %22 {strides = array<i32>} : memref<1x32x256xf32, #tpu.memory_space<vmem>>, vector<1x32x256xf32>,
    } else {
    }
    return
  }
  func.func @transform_0(%arg0: i32, %arg1: i32, %arg2: i32) -> (i32, i32, i32) {
    %c0_i32 = arith.constant 0 : i32
    %c0_i32_0 = arith.constant 0 : i32
    return %arg0, %arg1, %c0_i32 : i32, i32, i32
  }
  func.func @transform_1(%arg0: i32, %arg1: i32, %arg2: i32) -> (i32, i32, i32) {
    %0 = arith.minsi %arg2, %arg1 : i32
    %c0_i32 = arith.constant 0 : i32
    %c0_i32_0 = arith.constant 0 : i32
    return %arg0, %0, %c0_i32 : i32, i32, i32
  }
  func.func @transform_2(%arg0: i32, %arg1: i32, %arg2: i32) -> (i32, i32, i32) {
    %0 = arith.minsi %arg2, %arg1 : i32
    %c0_i32 = arith.constant 0 : i32
    %c0_i32_0 = arith.constant 0 : i32
    return %arg0, %0, %c0_i32 : i32, i32, i32
  }
  func.func @transform_3(%arg0: i32, %arg1: i32, %arg2: i32) -> (i32, i32) {
    %c0_i32 = arith.constant 0 : i32
    %c0_i32_0 = arith.constant 0 : i32
    %c0_i32_1 = arith.constant 0 : i32
    return %c0_i32, %c0_i32_0 : i32, i32
  }
  func.func @transform_4(%arg0: i32, %arg1: i32, %arg2: i32) -> (i32, i32) {
    %c0_i32 = arith.constant 0 : i32
    %c0_i32_0 = arith.constant 0 : i32
    %c0_i32_1 = arith.constant 0 : i32
    return %c0_i32, %c0_i32_0 : i32, i32
  }
  func.func @transform_5(%arg0: i32, %arg1: i32, %arg2: i32) -> (i32, i32, i32) {
    %c0_i32 = arith.constant 0 : i32
    %c0_i32_0 = arith.constant 0 : i32
    return %arg0, %c0_i32, %arg1 : i32, i32, i32
  }
}

</mosaic_0001>

<bundles_post_ra>
// kernel: tpu_custom_call.1
= control target key start
LH: loop header
LB: loop body
LE: loop exit
PB: predicated region body
PF: predicated region fallthrough
CT: control target
= control target key end

     0   :  { %10 = vsyncpa [#allocation6], 0  ;;  %s5047_s0 = inlined_call_operand.vmem [shape: bf16[2,256,32], index: 0, kind: input, shape index: {}]   ;;  %s5048_s1 = inlined_call_operand.vmem [shape: bf16[2,256,32], index: 1, kind: input, shape index: {}]   ;;  %s5049_s2 = inlined_call_operand.vmem [shape: bf16[2,256,32], index: 2, kind: input, shape index: {}]   ;;  %s5050_s3 = inlined_call_operand.vmem [shape: bf16[32,32], index: 3, kind: input, shape index: {}]   ;;  %s5051_s4 = inlined_call_operand.vmem [shape: f32[32,1], index: 4, kind: input, shape index: {}]   ;;  %s5052_s5 = inlined_call_operand.hbm [shape: f32[2,32,256], index: 5, kind: output, shape index: {}]  }
   0x1   :  { %12 = vsyncpa [#allocation6 + $0x1], 0  ;;  %s4018_s18 = smov 0   ;;  %s4020_s19 = smov 0  }
   0x2   :  { %s4022_s20 = smov 0   ;;  %s4024_s21 = smov 0  }
   0x3   :  { %s4026_s22 = smov 0   ;;  %s4028_s23 = smov 0  }
   0x4 LB: > { %s3251_s24 = sadd.s32 4294967295, %s3981_s23   ;;  %s3252_s25 = sadd.s32 4294967294, %s3981_s23   ;;  %s3981_s23 = sphi %s4028_s23, %s18_s23   ;;  %s3977_s22 = sphi %s4026_s22, %s5187_s22   ;;  %s3973_s21 = sphi %s4024_s21, %s5186_s21   ;;  %s3969_s20 = sphi %s4022_s20, %s5185_s20   ;;  %s3965_s19 = sphi %s4020_s19, %s5184_s19   ;;  %s3961_s18 = sphi %s4018_s18, %s5183_s18  }
   0x5   : > { %s37_s26 = sadd.s32 1, %s3977_s22  ;;  %s180_s27 = sadd.s32 1, %s3969_s20 }
   0x6   : > { %p39_p0 = scmp.ge.s32.totalorder %s37_s26, 2  ;;  %p190_p1 = scmp.ne.s32.totalorder %s3969_s20, %s3965_s19 }
   0x7   : > { %p191_p2 = scmp.eq.s32.totalorder %s3251_s24, 1  ;;  %p196_p3 = scmp.ne.s32.totalorder %s3965_s19, %s3961_s18 }
   0x8   : > { %s5189_s26 = smov (%p39_p0, %s37_s26), 0  ;;  %p197_p5 = scmp.eq.s32.totalorder %s3252_s25, 1 }
   0x9   : > { %p4058_p4 = por %p191_p2, %p190_p1  ;;  %s175_s29 = ssub.s32 %s3977_s22, %s5189_s26 }
   0xa   : > { %p3255_p6 = scmp.ge.s32.totalorder %s3981_s23, 1  ;;  %p178_p7 = scmp.eq.s32.totalorder %s175_s29, 0 }
   0xb   : > { %p4065_p8 = por %p197_p5, %p196_p3  ;;  %p268_p9 = scmp.lt.s32.totalorder %s3981_s23, 3 }
   0xc   : > { %s4071_s6 = scalar_select %p178_p7, %s3969_s20, %s180_s27  }
   0xd   : > { %p269_p10 = pnand %p3255_p6, %p268_p9 }
   0xf   : > { %272 = sbr.rel (%p269_p10) target bundleno = 1375 (0x55f), region = 40 }
  0x16   : > { %p323_p11 = scmp.lt.s32.totalorder %s3973_s21, 1  ;;  %vm430_vm0 = vcmask 261120   ;;  %v1014_v40 = vlaneseq  ;;  %v3983_v42 = vmov 0   ;;  %s319_s15 = sand.u32 1, %s3965_s19  }
  0x17   : > { %3595 = vset.pattern.permute.xlu0 %v3983_v42  ;;  %3596 = vset.pattern.permute.xlu1 %v3983_v42  ;;  %s3256_s16 = sshll.u32 %s319_s15, 6  ;;  %s3339_s24 = sshll.u32 %s3973_s21, 10 }
  0x18   : > { %s324_s7 = scalar_select %p323_p11, %s3973_s21, 1  ;;  %v4169_v41 = vshrl.u32 %v1014_v40, 7  ;;  %v4171_v43 = vand.u32 127, %v1014_v40 }
  0x19   : > { %s5001_s21 = scalar_lea.sflag [#allocation6], %s319_s15  ;;  %s3985_s9 = smov [#allocation5]  }
  0x1a   : > { %s4075_s8 = sshll.u32 %s324_s7, 7  ;;  %v1016_v44 = vadd.s32 8, %v4169_v41  ;;  %vm1087_vm1 = vcmp.ge.s32.totalorder %v4169_v41, %v4171_v43  ;;  %v1017_v50 = vadd.s32 16, %v4169_v41  ;;  %v1018_v53 = vadd.s32 24, %v4169_v41  ;;  %s4995_s7 = scalar_lea.hbm %s5052_s5, %s3339_s24 }
  0x1b   : > { %s4081_s11 = scalar_lea.vmem %s5048_s1, %s4075_s8  ;;  %s4098_s14 = scalar_lea.vmem %s5047_s0, %s4075_s8  ;;  %v1019_v60 = vadd.s32 32, %v4169_v41  ;;  %v1020_v63 = vadd.s32 40, %v4169_v41  ;;  %v1028_v40 = vadd.s32 104, %v4169_v41 }
  0x1c   : > { %v3597_v0 = vld [vmem:[%s4081_s11 + $0x40] sm:$0xff]   ;;  %v3599_v2 = vld [vmem:[%s4081_s11 + $0x48] sm:$0xff]   ;;  %v3601_v6 = vld [vmem:[%s4081_s11 + $0x50] sm:$0xff]   ;;  %vm1089_vm2 = vcmp.ge.s32.totalorder %v1016_v44, %v4171_v43  ;;  %vm1091_vm3 = vcmp.ge.s32.totalorder %v1017_v50, %v4171_v43  ;;  %vm1093_vm4 = vcmp.ge.s32.totalorder %v1018_v53, %v4171_v43  ;;  %s4378_s17 = scalar_lea.vmem %s5049_s2, %s4075_s8  ;;  %s3907_s10 = sshll.u32 %s3985_s9, 4  ;;  %s3908_s10 = int_to_ptr.vmem [resolvable:$false] %s3907_s10 }
  0x1d   : > { %v3598_v1 = vld [vmem:[%s4081_s11] sm:$0xff]   ;;  %3520 = vmatprep.subr.msk.bf16.mxu0 %vm430_vm0, %v3597_v0  ;;  %v3600_v4 = vld [vmem:[%s4081_s11 + $0x8] sm:$0xff]   ;;  %v3602_v7 = vld [vmem:[%s4081_s11 + $0x10] sm:$0xff]   ;;  %vm1095_vm5 = vcmp.ge.s32.totalorder %v1019_v60, %v4171_v43  ;;  %vm1097_vm6 = vcmp.ge.s32.totalorder %v1020_v63, %v4171_v43  ;;  %vm1113_vm14 = vcmp.ge.s32.totalorder %v1028_v40, %v4171_v43  ;;  %v1038_v40 = vadd.s32 184, %v4169_v41 }
  0x1e   : > { %v773_v3 = vsel %vm430_vm0, %v3598_v1, 0  ;;  %v776_v5 = vsel %vm430_vm0, %v3600_v4, 0  ;;  %v3613_v8 = vld [vmem:[%s4098_s14] sm:$0xff]   ;;  %v779_v9 = vsel %vm430_vm0, %v3602_v7, 0  ;;  %v3603_v10 = vld [vmem:[%s4081_s11 + $0x58] sm:$0xff]   ;;  %v3607_v16 = vld [vmem:[%s4081_s11 + $0x68] sm:$0xff]  }
  0x1f   : > { %3341 = vmatpush3.bf16.xpose.msra.mxu0 %v773_v3  ;;  %3356 = vmatprep.mubr.msk.bf16.mxu0 %vm430_vm0, %v3613_v8  ;;  %v3604_v11 = vld [vmem:[%s4081_s11 + $0x18] sm:$0xff]   ;;  %v3605_v13 = vld [vmem:[%s4081_s11 + $0x60] sm:$0xff]   ;;  %v3608_v17 = vld [vmem:[%s4081_s11 + $0x28] sm:$0xff]  }
  0x20   : > { %3521 = vmatprep.subr.msk.bf16.mxu0 %vm430_vm0, %v3599_v2  ;;  %v782_v12 = vsel %vm430_vm0, %v3604_v11, 0  ;;  %v3606_v14 = vld [vmem:[%s4081_s11 + $0x20] sm:$0xff]   ;;  %v788_v18 = vsel %vm430_vm0, %v3608_v17, 0  ;;  %v3609_v19 = vld [vmem:[%s4081_s11 + $0x70] sm:$0xff]   ;;  %v3611_v22 = vld [vmem:[%s4081_s11 + $0x78] sm:$0xff]  }
  0x21   : > { %v785_v15 = vsel %vm430_vm0, %v3606_v14, 0  ;;  %v3610_v20 = vld [vmem:[%s4081_s11 + $0x30] sm:$0xff]   ;;  %v3612_v23 = vld [vmem:[%s4081_s11 + $0x38] sm:$0xff]   ;;  %v3614_v25 = vld [vmem:[%s4098_s14 + $0x8] sm:$0xff]   ;;  %s3909_s11 = scalar_lea.vmem %s3908_s10, 2048 }
  0x22   : > { %v791_v21 = vsel %vm430_vm0, %v3610_v20, 0  ;;  %v794_v24 = vsel %vm430_vm0, %v3612_v23, 0  ;;  %v3615_v26 = vld [vmem:[%s4098_s14 + $0x10] sm:$0xff]   ;;  %v3616_v27 = vld [vmem:[%s4098_s14 + $0x18] sm:$0xff]   ;;  %v3617_v28 = vld [vmem:[%s4098_s14 + $0x20] sm:$0xff]   ;;  %v1024_v20 = vadd.s32 72, %v4169_v41 }
  0x23   : > { %v3618_v29 = vld [vmem:[%s4098_s14 + $0x28] sm:$0xff]   ;;  %v3619_v30 = vld [vmem:[%s4098_s14 + $0x30] sm:$0xff]   ;;  %v3620_v31 = vld [vmem:[%s4098_s14 + $0x38] sm:$0xff]  }
  0x24   : > { %v3621_v32 = vld [vmem:[%s4098_s14 + $0x40] sm:$0xff]   ;;  %v3622_v33 = vld [vmem:[%s4098_s14 + $0x48] sm:$0xff]   ;;  %v3623_v34 = vld [vmem:[%s4098_s14 + $0x50] sm:$0xff]   ;;  %vm1105_vm10 = vcmp.ge.s32.totalorder %v1024_v20, %v4171_v43 }
  0x25   : > { %v3624_v35 = vld [vmem:[%s4098_s14 + $0x58] sm:$0xff]   ;;  %v3625_v36 = vld [vmem:[%s4098_s14 + $0x60] sm:$0xff]   ;;  %v3626_v37 = vld [vmem:[%s4098_s14 + $0x68] sm:$0xff]  }
  0x26   : > { %v3627_v38 = vld [vmem:[%s4098_s14 + $0x70] sm:$0xff]   ;;  %v3628_v39 = vld [vmem:[%s4098_s14 + $0x78] sm:$0xff]  }
  0x27   : > { %3343 = vmatpush3.bf16.xpose.msra.mxu0 %v776_v5 }
  0x28   : > { %3522 = vmatprep.subr.msk.bf16.mxu0 %vm430_vm0, %v3601_v6  ;;  %v1021_v6 = vadd.s32 48, %v4169_v41 }
  0x2a   : > { %vm1099_vm7 = vcmp.ge.s32.totalorder %v1021_v6, %v4171_v43 }
  0x2f   : > { %3345 = vmatpush3.bf16.xpose.msra.mxu0 %v779_v9 }
  0x30   : > { %3523 = vmatprep.subr.msk.bf16.mxu0 %vm430_vm0, %v3603_v10  ;;  %v1022_v10 = vadd.s32 56, %v4169_v41 }
  0x32   : > { %vm1101_vm8 = vcmp.ge.s32.totalorder %v1022_v10, %v4171_v43 }
  0x37   : > { %3347 = vmatpush3.bf16.xpose.msra.mxu0 %v782_v12 }
  0x38   : > { %3524 = vmatprep.subr.msk.bf16.mxu0 %vm430_vm0, %v3605_v13 }
  0x3f   : > { %3349 = vmatpush3.bf16.xpose.msra.mxu0 %v785_v15 }
  0x40   : > { %3525 = vmatprep.subr.msk.bf16.mxu0 %vm430_vm0, %v3607_v16  ;;  %v1023_v16 = vadd.s32 64, %v4169_v41 }
  0x42   : > { %vm1103_vm9 = vcmp.ge.s32.totalorder %v1023_v16, %v4171_v43 }
  0x47   : > { %3351 = vmatpush3.bf16.xpose.msra.mxu0 %v788_v18 }
  0x48   : > { %3526 = vmatprep.subr.msk.bf16.mxu0 %vm430_vm0, %v3609_v19 }
  0x4f   : > { %3353 = vmatpush3.bf16.xpose.msra.mxu0 %v791_v21 }
  0x50   : > { %3527 = vmatprep.subr.msk.bf16.mxu0 %vm430_vm0, %v3611_v22 }
  0x57   : > { %3355 = vmatpush3.bf16.xpose.msra.mxu0 %v794_v24 }
  0x5e   : > { %3357 = vmatmul.mubr.msk.bf16.vlgmr.msra.gmra.mrb[0].mxu0 %vm430_vm0, %v3613_v8 }
  0x5f   : > { %3358 = vmatprep.mubr.msk.bf16.mxu0 %vm430_vm0, %v3614_v25 }
  0x66   : > { %3359 = vmatmul.mubr.msk.bf16.gmra.mrb[4].mxu0 %vm430_vm0, %v3614_v25 }
  0x67   : > { %3360 = vmatprep.mubr.msk.bf16.mxu0 %vm430_vm0, %v3615_v26 }
  0x6e   : > { %3361 = vmatmul.mubr.msk.bf16.gmra.mrb[8].mxu0 %vm430_vm0, %v3615_v26  ;;  %v1025_v26 = vadd.s32 80, %v4169_v41 }
  0x6f   : > { %3362 = vmatprep.mubr.msk.bf16.mxu0 %vm430_vm0, %v3616_v27 }
  0x70   : > { %vm1107_vm11 = vcmp.ge.s32.totalorder %v1025_v26, %v4171_v43 }
  0x76   : > { %3363 = vmatmul.mubr.msk.bf16.gmra.mrb[12].mxu0 %vm430_vm0, %v3616_v27 }
  0x77   : > { %3364 = vmatprep.mubr.msk.bf16.mxu0 %vm430_vm0, %v3617_v28 }
  0x7e   : > { %3365 = vmatmul.mubr.msk.bf16.gmra.mrb[16].mxu0 %vm430_vm0, %v3617_v28 }
  0x7f   : > { %3366 = vmatprep.mubr.msk.bf16.mxu0 %vm430_vm0, %v3618_v29 }
  0x86   : > { %3367 = vmatmul.mubr.msk.bf16.gmra.mrb[20].mxu0 %vm430_vm0, %v3618_v29 }
  0x87   : > { %3368 = vmatprep.mubr.msk.bf16.mxu0 %vm430_vm0, %v3619_v30 }
  0x8e   : > { %3369 = vmatmul.mubr.msk.bf16.gmra.mrb[24].mxu0 %vm430_vm0, %v3619_v30  ;;  %v1026_v30 = vadd.s32 88, %v4169_v41 }
  0x8f   : > { %3370 = vmatprep.mubr.msk.bf16.mxu0 %vm430_vm0, %v3620_v31 }
  0x90   : > { %vm1109_vm12 = vcmp.ge.s32.totalorder %v1026_v30, %v4171_v43 }
  0x96   : > { %3371 = vmatmul.mubr.msk.bf16.gmra.mrb[28].mxu0 %vm430_vm0, %v3620_v31 }
  0x97   : > { %3372 = vmatprep.mubr.msk.bf16.mxu0 %vm430_vm0, %v3621_v32 }
  0x9e   : > { %3373 = vmatmul.mubr.msk.bf16.gmra.mrb[32].mxu0 %vm430_vm0, %v3621_v32 }
  0x9f   : > { %3374 = vmatprep.mubr.msk.bf16.mxu0 %vm430_vm0, %v3622_v33 }
  0xa6   : > { %3375 = vmatmul.mubr.msk.bf16.gmra.mrb[36].mxu0 %vm430_vm0, %v3622_v33 }
  0xa7   : > { %3376 = vmatprep.mubr.msk.bf16.mxu0 %vm430_vm0, %v3623_v34 }
  0xae   : > { %3377 = vmatmul.mubr.msk.bf16.gmra.mrb[40].mxu0 %vm430_vm0, %v3623_v34 }
  0xaf   : > { %3378 = vmatprep.mubr.msk.bf16.mxu0 %vm430_vm0, %v3624_v35 }
  0xb6   : > { %3379 = vmatmul.mubr.msk.bf16.gmra.mrb[44].mxu0 %vm430_vm0, %v3624_v35 }
  0xb7   : > { %3380 = vmatprep.mubr.msk.bf16.mxu0 %vm430_vm0, %v3625_v36 }
  0xbe   : > { %3381 = vmatmul.mubr.msk.bf16.gmra.mrb[48].mxu0 %vm430_vm0, %v3625_v36  ;;  %v1027_v36 = vadd.s32 96, %v4169_v41 }
  0xbf   : > { %3382 = vmatprep.mubr.msk.bf16.mxu0 %vm430_vm0, %v3626_v37 }
  0xc0   : > { %vm1111_vm13 = vcmp.ge.s32.totalorder %v1027_v36, %v4171_v43 }
  0xc6   : > { %3383 = vmatmul.mubr.msk.bf16.gmra.mrb[52].mxu0 %vm430_vm0, %v3626_v37 }
  0xc7   : > { %3384 = vmatprep.mubr.msk.bf16.mxu0 %vm430_vm0, %v3627_v38 }
  0xce   : > { %3385 = vmatmul.mubr.msk.bf16.gmra.mrb[56].mxu0 %vm430_vm0, %v3627_v38 }
  0xcf   : > { %3386 = vmatprep.mubr.msk.bf16.mxu0 %vm430_vm0, %v3628_v39 }
  0xd6   : > { %3387 = vmatmul.mubr.msk.bf16.gmra.mrb[60].mxu0 %vm430_vm0, %v3628_v39 }
 0x131   : > { %v854_v45 = vpop.f32.mrb[0].mxu0 }
 0x132   : > { %v4177_v46 = vsel %vm1087_vm1, %v854_v45, -1e+09  ;;  %v856_v47 = vpop.f32.mrb[1].mxu0 }
 0x133   : > { %v858_v48 = vpop.f32.mrb[2].mxu0  ;;  %v1247_v49 = vmax.f32 %v4177_v46, -1e+09 }
 0x134   : > { %v4181_v51 = vsel %vm1089_vm2, %v858_v48, -1e+09  ;;  %v860_v52 = vpop.f32.mrb[3].mxu0 }
 0x135   : > { %1248 = vmax.xlane.f32.xlu0 %v1247_v49  ;;  %v1250_v54 = vmax.f32 %v4181_v51, -1e+09  ;;  %v1029_v49 = vadd.s32 112, %v4169_v41 }
 0x137   : > { %vm1115_vm15 = vcmp.ge.s32.totalorder %v1029_v49, %v4171_v43 }
 0x139   : > { %1251 = vmax.xlane.f32.xlu0 %v1250_v54  ;;  %v864_v55 = vpop.f32.mrb[4].mxu0  ;;  %v1030_v54 = vadd.s32 120, %v4169_v41 }
 0x13a   : > { %v4187_v56 = vsel %vm1091_vm3, %v864_v55, -1e+09  ;;  %v866_v57 = vpop.f32.mrb[5].mxu0 }
 0x13b   : > { %v868_v58 = vpop.f32.mrb[6].mxu0  ;;  %v1253_v59 = vmax.f32 %v4187_v56, -1e+09  ;;  %vm1117_vm1 = vcmp.ge.s32.totalorder %v1030_v54, %v4171_v43 }
 0x13c   : > { %v4191_v61 = vsel %vm1093_vm4, %v868_v58, -1e+09  ;;  %v870_v62 = vpop.f32.mrb[7].mxu0 }
 0x13d   : > { %1254 = vmax.xlane.f32.xlu1 %v1253_v59  ;;  %v1256_v0 = vmax.f32 %v4191_v61, -1e+09 }
 0x141   : > { %1257 = vmax.xlane.f32.xlu1 %v1256_v0  ;;  %v874_v1 = vpop.f32.mrb[8].mxu0  ;;  %v1031_v0 = vadd.s32 128, %v4169_v41 }
 0x142   : > { %v4197_v2 = vsel %vm1095_vm5, %v874_v1, -1e+09  ;;  %v876_v3 = vpop.f32.mrb[9].mxu0  ;;  %v4254_v1 = vadd.s32 128, %v4171_v43  ;;  %v1033_v43 = vadd.s32 144, %v4169_v41 }
 0x143   : > { %v878_v4 = vpop.f32.mrb[10].mxu0  ;;  %v1259_v5 = vmax.f32 %v4197_v2, -1e+09 }
 0x144   : > { %v4201_v7 = vsel %vm1097_vm6, %v878_v4, -1e+09  ;;  %v880_v8 = vpop.f32.mrb[11].mxu0  ;;  %v1032_v4 = vadd.s32 136, %v4169_v41  ;;  %vm1120_vm2 = vcmp.ge.s32.totalorder %v1031_v0, %v4254_v1  ;;  %vm1124_vm4 = vcmp.ge.s32.totalorder %v1033_v43, %v4254_v1 }
 0x145   : > { %1260 = vmax.xlane.f32.xlu0 %v1259_v5  ;;  %v1262_v9 = vmax.f32 %v4201_v7, -1e+09 }
 0x146   : > { %vm1122_vm3 = vcmp.ge.s32.totalorder %v1032_v4, %v4254_v1  ;;  %v1041_v4 = vadd.s32 208, %v4169_v41 }
 0x147   : > { %1263 = vmax.xlane.f32.xlu1 %v1262_v9 }
 0x149   : > { %v884_v11 = vpop.f32.mrb[12].mxu0 }
 0x14a   : > { %v4207_v12 = vsel %vm1099_vm7, %v884_v11, -1e+09  ;;  %v886_v13 = vpop.f32.mrb[13].mxu0 }
 0x14b   : > { %v888_v14 = vpop.f32.mrb[14].mxu0  ;;  %v1265_v15 = vmax.f32 %v4207_v12, -1e+09 }
 0x14c   : > { %v4211_v17 = vsel %vm1101_vm8, %v888_v14, -1e+09  ;;  %v890_v18 = vpop.f32.mrb[15].mxu0 }
 0x14d   : > { %1266 = vmax.xlane.f32.xlu0 %v1265_v15  ;;  %v1268_v19 = vmax.f32 %v4211_v17, -1e+09  ;;  %v1034_v15 = vadd.s32 152, %v4169_v41 }
 0x14f   : > { %1269 = vmax.xlane.f32.xlu1 %v1268_v19  ;;  %vm1126_vm5 = vcmp.ge.s32.totalorder %v1034_v15, %v4254_v1 }
 0x151   : > { %v894_v21 = vpop.f32.mrb[16].mxu0 }
 0x152   : > { %v4217_v22 = vsel %vm1103_vm9, %v894_v21, -1e+09  ;;  %v896_v23 = vpop.f32.mrb[17].mxu0  ;;  %vm1134_vm9 = vcmp.ge.s32.totalorder %v1038_v40, %v4254_v1 }
 0x153   : > { %v898_v24 = vpop.f32.mrb[18].mxu0  ;;  %v1271_v25 = vmax.f32 %v4217_v22, -1e+09  ;;  %v1035_v23 = vadd.s32 160, %v4169_v41 }
 0x154   : > { %v4221_v27 = vsel %vm1105_vm10, %v898_v24, -1e+09  ;;  %v900_v28 = vpop.f32.mrb[19].mxu0 }
 0x155   : > { %1272 = vmax.xlane.f32.xlu0 %v1271_v25  ;;  %v1274_v29 = vmax.f32 %v4221_v27, -1e+09  ;;  %v1036_v28 = vadd.s32 168, %v4169_v41  ;;  %vm1128_vm6 = vcmp.ge.s32.totalorder %v1035_v23, %v4254_v1 }
 0x157   : > { %1275 = vmax.xlane.f32.xlu1 %v1274_v29  ;;  %vm1130_vm7 = vcmp.ge.s32.totalorder %v1036_v28, %v4254_v1 }
 0x159   : > { %v904_v31 = vpop.f32.mrb[20].mxu0 }
 0x15a   : > { %v4227_v32 = vsel %vm1107_vm11, %v904_v31, -1e+09  ;;  %v906_v33 = vpop.f32.mrb[21].mxu0 }
 0x15b   : > { %v908_v34 = vpop.f32.mrb[22].mxu0  ;;  %v1277_v35 = vmax.f32 %v4227_v32, -1e+09 }
 0x15c   : > { %v4231_v37 = vsel %vm1109_vm12, %v908_v34, -1e+09  ;;  %v910_v38 = vpop.f32.mrb[23].mxu0  ;;  %vm1140_vm12 = vcmp.ge.s32.totalorder %v1041_v4, %v4254_v1  ;;  %v3629_v4 = vld [vmem:[%s4378_s17 + $0x40] sm:$0xff]  }
 0x15d   : > { %1278 = vmax.xlane.f32.xlu0 %v1277_v35  ;;  %v1280_v39 = vmax.f32 %v4231_v37, -1e+09  ;;  %v1037_v35 = vadd.s32 176, %v4169_v41  ;;  %3388 = vmatprep.subr.bf16.mxu1 %v3629_v4  ;;  %v3640_v4 = vld [vmem:[%s4378_s17 + $0x28] sm:$0xff]  }
 0x15f   : > { %1281 = vmax.xlane.f32.xlu1 %v1280_v39  ;;  %vm1132_vm8 = vcmp.ge.s32.totalorder %v1037_v35, %v4254_v1 }
 0x161   : > { %v914_v42 = vpop.f32.mrb[24].mxu0 }
 0x162   : > { %v4237_v44 = vsel %vm1111_vm13, %v914_v42, -1e+09  ;;  %v916_v45 = vpop.f32.mrb[25].mxu0 }
 0x163   : > { %v918_v47 = vpop.f32.mrb[26].mxu0  ;;  %v1283_v48 = vmax.f32 %v4237_v44, -1e+09 }
 0x164   : > { %v4241_v50 = vsel %vm1113_vm14, %v918_v47, -1e+09  ;;  %v920_v52 = vpop.f32.mrb[27].mxu0 }
 0x165   : > { %1284 = vmax.xlane.f32.xlu0 %v1283_v48  ;;  %v1286_v53 = vmax.f32 %v4241_v50, -1e+09  ;;  %v1039_v52 = vadd.s32 192, %v4169_v41 }
 0x167   : > { %1287 = vmax.xlane.f32.xlu1 %v1286_v53  ;;  %vm1136_vm10 = vcmp.ge.s32.totalorder %v1039_v52, %v4254_v1 }
 0x169   : > { %v924_v55 = vpop.f32.mrb[28].mxu0 }
 0x16a   : > { %v4247_v57 = vsel %vm1115_vm15, %v924_v55, -1e+09  ;;  %v926_v58 = vpop.f32.mrb[29].mxu0 }
 0x16b   : > { %v928_v59 = vpop.f32.mrb[30].mxu0  ;;  %v1289_v60 = vmax.f32 %v4247_v57, -1e+09  ;;  %v1040_v58 = vadd.s32 200, %v4169_v41 }
 0x16c   : > { %v4250_v62 = vsel %vm1117_vm1, %v928_v59, -1e+09  ;;  %v930_v63 = vpop.f32.mrb[31].mxu0 }
 0x16d   : > { %1290 = vmax.xlane.f32.xlu0 %v1289_v60  ;;  %v1292_v3 = vmax.f32 %v4250_v62, -1e+09  ;;  %vm1138_vm11 = vcmp.ge.s32.totalorder %v1040_v58, %v4254_v1 }
 0x16f   : > { %1293 = vmax.xlane.f32.xlu1 %v1292_v3 }
 0x171   : > { %v4259_v5 = vpop.f32.mrb[32].mxu0 }
 0x172   : > { %v936_v6 = vpop.f32.mrb[33].mxu0 }
 0x173   : > { %v4262_v8 = vsel %vm1120_vm2, %v936_v6, -1e+09  ;;  %v4264_v9 = vpop.f32.mrb[34].mxu0 }
 0x174   : > { %v940_v10 = vpop.f32.mrb[35].mxu0  ;;  %v1295_v11 = vmax.f32 %v4259_v5, %v4262_v8 }
 0x175   : > { %v4269_v13 = vsel %vm1122_vm3, %v940_v10, -1e+09 }
 0x176   : > { %1296 = vmax.xlane.f32.xlu0 %v1295_v11  ;;  %v1298_v14 = vmax.f32 %v4264_v9, %v4269_v13  ;;  %v1042_v11 = vadd.s32 216, %v4169_v41 }
 0x178   : > { %1299 = vmax.xlane.f32.xlu1 %v1298_v14  ;;  %vm1142_vm13 = vcmp.ge.s32.totalorder %v1042_v11, %v4254_v1  ;;  %v3632_v11 = vld [vmem:[%s4378_s17 + $0x8] sm:$0xff]  }
 0x179   : > { %v4275_v16 = vpop.f32.mrb[36].mxu0 }
 0x17a   : > { %v946_v18 = vpop.f32.mrb[37].mxu0 }
 0x17b   : > { %v4278_v19 = vsel %vm1124_vm4, %v946_v18, -1e+09  ;;  %v4280_v20 = vpop.f32.mrb[38].mxu0 }
 0x17c   : > { %5097 = vst [vmem:[#allocation8_spill] sm:$0xff] %v4280_v20  ;;  %v950_v21 = vpop.f32.mrb[39].mxu0  ;;  %v1301_v24 = vmax.f32 %v4275_v16, %v4278_v19 }
 0x17d   : > { %v4285_v25 = vsel %vm1126_vm5, %v950_v21, -1e+09 }
 0x17e   : > { %5098 = vst [vmem:[#allocation9_spill] sm:$0xff] %v4285_v25  ;;  %1302 = vmax.xlane.f32.xlu0 %v1301_v24  ;;  %v1304_v26 = vmax.f32 %v4280_v20, %v4285_v25  ;;  %v1043_v24 = vadd.s32 224, %v4169_v41 }
 0x180   : > { %1305 = vmax.xlane.f32.xlu1 %v1304_v26  ;;  %vm1144_vm14 = vcmp.ge.s32.totalorder %v1043_v24, %v4254_v1 }
 0x181   : > { %v4291_v29 = vpop.f32.mrb[40].mxu0 }
 0x182   : > { %5099 = vst [vmem:[#allocation10_spill] sm:$0xff] %v4291_v29  ;;  %v956_v30 = vpop.f32.mrb[41].mxu0 }
 0x183   : > { %v4294_v31 = vsel %vm1128_vm6, %v956_v30, -1e+09  ;;  %v4296_v33 = vpop.f32.mrb[42].mxu0 }
 0x184   : > { %5100 = vst [vmem:[#allocation11_spill] sm:$0xff] %v4294_v31  ;;  %v960_v34 = vpop.f32.mrb[43].mxu0  ;;  %v1307_v36 = vmax.f32 %v4291_v29, %v4294_v31 }
 0x185   : > { %v4301_v38 = vsel %vm1130_vm7, %v960_v34, -1e+09  ;;  %v1044_v34 = vadd.s32 232, %v4169_v41 }
 0x186   : > { %1308 = vmax.xlane.f32.xlu1 %v1307_v36  ;;  %v1310_v39 = vmax.f32 %v4296_v33, %v4301_v38 }
 0x187   : > { %vm1146_vm15 = vcmp.ge.s32.totalorder %v1044_v34, %v4254_v1 }
 0x188   : > { %1311 = vmax.xlane.f32.xlu0 %v1310_v39 }
 0x189   : > { %v4307_v42 = vpop.f32.mrb[44].mxu0 }
 0x18a   : > { %5101 = vst [vmem:[#allocation12_spill] sm:$0xff] %v4307_v42  ;;  %v966_v45 = vpop.f32.mrb[45].mxu0 }
 0x18b   : > { %v4310_v47 = vsel %vm1132_vm8, %v966_v45, -1e+09  ;;  %v4312_v48 = vpop.f32.mrb[46].mxu0 }
 0x18c   : > { %5102 = vst [vmem:[#allocation13_spill] sm:$0xff] %v4310_v47  ;;  %v970_v49 = vpop.f32.mrb[47].mxu0  ;;  %v1313_v53 = vmax.f32 %v4307_v42, %v4310_v47 }
 0x18d   : > { %v4317_v54 = vsel %vm1134_vm9, %v970_v49, -1e+09 }
 0x18e   : > { %1314 = vmax.xlane.f32.xlu1 %v1313_v53  ;;  %v1316_v55 = vmax.f32 %v4312_v48, %v4317_v54 }
 0x190   : > { %1317 = vmax.xlane.f32.xlu0 %v1316_v55 }
 0x191   : > { %v4323_v59 = vpop.f32.mrb[48].mxu0 }
 0x192   : > { %5103 = vst [vmem:[#allocation14_spill] sm:$0xff] %v4323_v59  ;;  %v976_v60 = vpop.f32.mrb[49].mxu0 }
 0x193   : > { %v4326_v63 = vsel %vm1136_vm10, %v976_v60, -1e+09  ;;  %v4328_v0 = vpop.f32.mrb[50].mxu0 }
 0x194   : > { %5104 = vst [vmem:[#allocation15_spill] sm:$0xff] %v4326_v63  ;;  %v980_v3 = vpop.f32.mrb[51].mxu0  ;;  %v1319_v6 = vmax.f32 %v4323_v59, %v4326_v63 }
 0x195   : > { %v4333_v10 = vsel %vm1138_vm11, %v980_v3, -1e+09 }
 0x196   : > { %5105 = vst [vmem:[#allocation16_spill] sm:$0xff] %v4333_v10  ;;  %1320 = vmax.xlane.f32.xlu0 %v1319_v6  ;;  %v1322_v43 = vmax.f32 %v4328_v0, %v4333_v10  ;;  %v3630_v6 = vld [vmem:[%s4378_s17] sm:$0xff]  }
 0x197   : > { %3389 = vmatpush3.bf16.msra.mxu1 %v3630_v6 }
 0x198   : > { %1323 = vmax.xlane.f32.xlu1 %v1322_v43  ;;  %v3631_v43 = vld [vmem:[%s4378_s17 + $0x48] sm:$0xff]  }
 0x199   : > { %v4339_v14 = vpop.f32.mrb[52].mxu0  ;;  %3390 = vmatprep.subr.bf16.mxu1 %v3631_v43  ;;  %v3641_v43 = vld [vmem:[%s4378_s17 + $0x70] sm:$0xff]  }
 0x19a   : > { %5106 = vst [vmem:[#allocation17_spill] sm:$0xff] %v4339_v14  ;;  %v986_v15 = vpop.f32.mrb[53].mxu0 }
 0x19b   : > { %v4342_v18 = vsel %vm1140_vm12, %v986_v15, -1e+09  ;;  %v4344_v21 = vpop.f32.mrb[54].mxu0  ;;  %3391 = vmatpush3.bf16.msra.mxu1 %v3632_v11  ;;  %v3633_v15 = vld [vmem:[%s4378_s17 + $0x50] sm:$0xff]  }
 0x19c   : > { %5107 = vst [vmem:[#allocation18_spill] sm:$0xff] %v4342_v18  ;;  %5108 = vst [vmem:[#allocation19_spill] sm:$0xff] %v4344_v21  ;;  %v990_v23 = vpop.f32.mrb[55].mxu0  ;;  %v1325_v26 = vmax.f32 %v4339_v14, %v4342_v18  ;;  %3392 = vmatprep.subr.bf16.mxu1 %v3633_v15  ;;  %v3642_v11 = vld [vmem:[%s4378_s17 + $0x30] sm:$0xff]  }
 0x19d   : > { %v4349_v28 = vsel %vm1142_vm13, %v990_v23, -1e+09  ;;  %v3634_v23 = vld [vmem:[%s4378_s17 + $0x10] sm:$0xff]  }
 0x19e   : > { %5109 = vst [vmem:[#allocation20_spill] sm:$0xff] %v4349_v28  ;;  %1326 = vmax.xlane.f32.xlu1 %v1325_v26  ;;  %v1328_v30 = vmax.f32 %v4344_v21, %v4349_v28  ;;  %v3635_v26 = vld [vmem:[%s4378_s17 + $0x58] sm:$0xff]  }
 0x19f   : > { %3393 = vmatpush3.bf16.msra.mxu1 %v3634_v23  ;;  %v3643_v23 = vld [vmem:[%s4378_s17 + $0x78] sm:$0xff]  }
 0x1a0   : > { %1329 = vmax.xlane.f32.xlu0 %v1328_v30  ;;  %v3636_v30 = vld [vmem:[%s4378_s17 + $0x18] sm:$0xff]   ;;  %3394 = vmatprep.subr.bf16.mxu1 %v3635_v26 }
 0x1a1   : > { %v4355_v35 = vpop.f32.mrb[56].mxu0  ;;  %v3644_v26 = vld [vmem:[%s4378_s17 + $0x38] sm:$0xff]  }
 0x1a2   : > { %5110 = vst [vmem:[#allocation21_spill] sm:$0xff] %v4355_v35  ;;  %v996_v36 = vpop.f32.mrb[57].mxu0 }
 0x1a3   : > { %v4358_v39 = vsel %vm1144_vm14, %v996_v36, -1e+09  ;;  %v4360_v40 = vpop.f32.mrb[58].mxu0  ;;  %3395 = vmatpush3.bf16.msra.mxu1 %v3636_v30  ;;  %v3637_v36 = vld [vmem:[%s4378_s17 + $0x60] sm:$0xff]  }
 0x1a4   : > { %5111 = vst [vmem:[#allocation22_spill] sm:$0xff] %v4358_v39  ;;  %5112 = vst [vmem:[#allocation23_spill] sm:$0xff] %v4360_v40  ;;  %v1000_v45 = vpop.f32.mrb[59].mxu0  ;;  %v1331_v49 = vmax.f32 %v4355_v35, %v4358_v39  ;;  %3396 = vmatprep.subr.bf16.mxu1 %v3637_v36  ;;  %v1045_v35 = vadd.s32 240, %v4169_v41 }
 0x1a5   : > { %v4364_v52 = vsel %vm1146_vm15, %v1000_v45, -1e+09  ;;  %v3638_v45 = vld [vmem:[%s4378_s17 + $0x20] sm:$0xff]  }
 0x1a6   : > { %5113 = vst [vmem:[#allocation24_spill] sm:$0xff] %v4364_v52  ;;  %v1334_v53 = vmax.f32 %v4360_v40, %v4364_v52  ;;  %1332 = vmax.xlane.f32.xlu0 %v1331_v49  ;;  %vm1148_vm2 = vcmp.ge.s32.totalorder %v1045_v35, %v4254_v1 }
 0x1a7   : > { %3397 = vmatpush3.bf16.msra.mxu1 %v3638_v45 }
 0x1a8   : > { %1335 = vmax.xlane.f32.xlu1 %v1334_v53  ;;  %v3639_v53 = vld [vmem:[%s4378_s17 + $0x68] sm:$0xff]   ;;  %s321_s17 = scalar_lea.vmem [#allocation5], %s3256_s16 }
 0x1a9   : > { %v4368_v55 = vpop.f32.mrb[60].mxu0  ;;  %3398 = vmatprep.subr.bf16.mxu1 %v3639_v53  ;;  %s3133_s25 = sshll.u32 %s321_s17, 4  ;;  %s4997_s25 = int_to_ptr.vmem [resolvable:$true] %s3133_s25 }
 0x1aa   : > { %5114 = vst [vmem:[#allocation25_spill] sm:$0xff] %v4368_v55  ;;  %v4370_v58 = vpop.f32.mrb[61].mxu0  ;;  %s3903_s8 = scalar_lea.vmem %s4997_s25, 1024  ;;  %p3910_p1 = scmp.lt.s32.totalorder %s4997_s25, %s3908_s10 }
 0x1ab   : > { %v4372_v60 = vpop.f32.mrb[62].mxu0  ;;  %3399 = vmatpush3.bf16.msra.mxu1 %v3640_v4  ;;  %v4447_v59 = vsel %vm1148_vm2, %v4370_v58, -1e+09  ;;  %p3904_p12 = scmp.ne.s32.totalorder %s4997_s25, %s3903_s8  ;;  %p3911_p2 = scmp.lt.s32.totalorder %s3909_s11, %s3903_s8 }
 0x1ac   : > { %5115 = vst [vmem:[#allocation26_spill] sm:$0xff] %v4372_v60  ;;  %v1010_v3 = vpop.f32.mrb[63].mxu0  ;;  %3400 = vmatprep.subr.bf16.mxu1 %v3641_v43  ;;  %5120 = vst [vmem:[#allocation31_spill] sm:$0xff] %v4447_v59 }
 0x1ad   : > { %p3905_p13 = pnand %p3904_p12, %p4058_p4  ;;  %p3912_p3 = por %p3911_p2, %p3910_p1 }
 0x1af   : > { %3401 = vmatpush3.bf16.msra.mxu1 %v3642_v11  ;;  %p3906_p0 = pneg %p3905_p13 }
 0x1b0   : > { %3402 = vmatprep.subr.bf16.mxu1 %v3643_v23  ;;  %v1046_v23 = vadd.s32 248, %v4169_v41 }
 0x1b1   : > { %p3913_p5 = pnand %p3912_p3, %p3906_p0 }
 0x1b2   : > { %vm1150_vm1 = vcmp.ge.s32.totalorder %v1046_v23, %v4254_v1 }
 0x1b3   : > { %3403 = vmatpush3.bf16.msra.mxu1 %v3644_v26  ;;  %v4434_v26 = vsel %vm1150_vm1, %v1010_v3, -1e+09  ;;  %v1337_v3 = vmax.f32 %v4368_v55, %v4447_v59 }
 0x1b4   : > { %5116 = vst [vmem:[#allocation27_spill] sm:$0xff] %v4434_v26  ;;  %v1340_v39 = vmax.f32 %v4372_v60, %v4434_v26 }
 0x1c2   : > { %v4386_v24 = vpop.xlane.xlu0 %1248 }
 0x1c3   : > { %1473 = vperm.xlu0 %3595, %v4386_v24  }
 0x1c6   : > { %v4391_v34 = vpop.xlane.xlu0 %1251 }
 0x1c7   : > { %1478 = vperm.xlu1 %3596, %v4391_v34  }
 0x1ca   : > { %v4396_v49 = vpop.xlane.xlu1 %1254 }
 0x1cb   : > { %1483 = vperm.xlu1 %3596, %v4396_v49  }
 0x1ce   : > { %v4401_v6 = vpop.xlane.xlu1 %1257 }
 0x1cf   : > { %1488 = vperm.xlu1 %3596, %v4401_v6  }
 0x1d2   : > { %v4406_v15 = vpop.xlane.xlu0 %1260 }
 0x1d3   : > { %1493 = vperm.xlu0 %3595, %v4406_v15  }
 0x1d4   : > { %v4411_v30 = vpop.xlane.xlu1 %1263 }
 0x1d7   : > { %1498 = vperm.xlu0 %3595, %v4411_v30  }
 0x1da   : > { %v4414_v36 = vpop.xlane.xlu0 %1266 }
 0x1db   : > { %1503 = vperm.xlu1 %3596, %v4414_v36  }
 0x1dc   : > { %v4417_v45 = vpop.xlane.xlu1 %1269 }
 0x1df   : > { %1508 = vperm.xlu1 %3596, %v4417_v45  }
 0x1e2   : > { %v4420_v53 = vpop.xlane.xlu0 %1272 }
 0x1e3   : > { %1513 = vperm.xlu0 %3595, %v4420_v53  }
 0x1e4   : > { %v4423_v4 = vpop.xlane.xlu1 %1275 }
 0x1e7   : > { %1518 = vperm.xlu0 %3595, %v4423_v4  }
 0x1ea   : > { %v4426_v43 = vpop.xlane.xlu0 %1278 }
 0x1eb   : > { %1523 = vperm.xlu1 %3596, %v4426_v43  }
 0x1ec   : > { %v4429_v11 = vpop.xlane.xlu1 %1281 }
 0x1ef   : > { %1528 = vperm.xlu1 %3596, %v4429_v11  }
 0x1f2   : > { %v4442_v14 = vpop.xlane.xlu0 %1284 }
 0x1f3   : > { %5118 = vst [vmem:[#allocation29_spill] sm:$0xff] %v4442_v14 }
 0x1f4   : > { %v4439_v18 = vpop.xlane.xlu1 %1287 }
 0x1f5   : > { %5117 = vst [vmem:[#allocation28_spill] sm:$0xff] %v4439_v18 }
 0x1fa   : > { %v4449_v23 = vpop.xlane.xlu0 %1290 }
 0x1fb   : > { %5121 = vst [vmem:[#allocation32_spill] sm:$0xff] %v4449_v23 }
 0x1fc   : > { %v4444_v63 = vpop.xlane.xlu1 %1293 }
 0x1fd   : > { %5119 = vst [vmem:[#allocation30_spill] sm:$0xff] %v4444_v63 }
 0x203   : > { %v4455_v41 = vpop.xlane.xlu0 %1296 }
 0x205   : > { %v4453_v26 = vpop.xlane.xlu1 %1299 }
 0x206   : > { %1341 = vmax.xlane.f32.xlu0 %v1340_v39 }
 0x20b   : > { %v4459_v1 = vpop.xlane.xlu0 %1302 }
 0x20d   : > { %v4457_v39 = vpop.xlane.xlu1 %1305 }
 0x213   : > { %1338 = vmax.xlane.f32.xlu1 %v1337_v3  ;;  %v4462_v35 = vpop.xlane.xlu1 %1308 }
 0x215   : > { %v4464_v58 = vpop.xlane.xlu0 %1311 }
 0x21b   : > { %v4467_v60 = vpop.xlane.xlu1 %1314 }
 0x21c   : > { %1533 = vperm.xlu0 %3595, %v4442_v14  }
 0x21d   : > { %v4471_v3 = vpop.xlane.xlu0 %1317 }
 0x220   : > { %1538 = vperm.xlu0 %3595, %v4439_v18  }
 0x223   : > { %v4477_v14 = vpop.xlane.xlu0 %1320 }
 0x224   : > { %1553 = vperm.xlu1 %3596, %v4455_v41   ;;  %1543 = vperm.xlu0 %3595, %v4449_v23  }
 0x225   : > { %v4475_v59 = vpop.xlane.xlu1 %1323 }
 0x228   : > { %1578 = vperm.xlu1 %3596, %v4464_v58   ;;  %1548 = vperm.xlu0 %3595, %v4444_v63  }
 0x22b   : > { %v4481_v18 = vpop.xlane.xlu1 %1326 }
 0x22c   : > { %1588 = vperm.xlu1 %3596, %v4471_v3   ;;  %1558 = vperm.xlu0 %3595, %v4453_v26   ;;  %5122 = vst [vmem:[#allocation33_spill] sm:$0xff] %v4481_v18 }
 0x22d   : > { %v4485_v23 = vpop.xlane.xlu0 %1329 }
 0x230   : > { %1598 = vperm.xlu1 %3596, %v4475_v59   ;;  %1563 = vperm.xlu0 %3595, %v4459_v1  }
 0x233   : > { %v4494_v55 = vpop.xlane.xlu0 %1332 }
 0x234   : > { %1608 = vperm.xlu1 %3596, %v4485_v23   ;;  %1568 = vperm.xlu0 %3595, %v4457_v39   ;;  %5124 = vst [vmem:[#allocation35_spill] sm:$0xff] %v4494_v55 }
 0x235   : > { %v4489_v63 = vpop.xlane.xlu1 %1335 }
 0x236   : > { %5123 = vst [vmem:[#allocation34_spill] sm:$0xff] %v4489_v63 }
 0x238   : > { %1618 = vperm.xlu1 %3596, %v4489_v63   ;;  %1573 = vperm.xlu0 %3595, %v4462_v35  }
 0x23c   : > { %1583 = vperm.xlu0 %3595, %v4467_v60  }
 0x240   : > { %1593 = vperm.xlu0 %3595, %v4477_v14  }
 0x242   : > { %v1474_v47 = vpop.permute.xlu0 %1473 }
 0x243   : > { %v1631_v42 = vsub.f32 %v4177_v46, %v1474_v47  ;;  %v1632_v52 = vsub.f32 -1e+09, %v1474_v47 }
 0x244   : > { %1603 = vperm.xlu0 %3595, %v4481_v18  }
 0x245   : > { %v1695_v40 = vmul.f32 1.442695, %v1631_v42  ;;  %v1697_v31 = vmul.f32 1.442695, %v1632_v52 }
 0x246   : > { %v1479_v29 = vpop.permute.xlu1 %1478 }
 0x247   : > { %3647 = vpow2.f32 %v1695_v40  ;;  %v1633_v63 = vsub.f32 %v4181_v51, %v1479_v29  ;;  %v1634_v28 = vsub.f32 -1e+09, %v1479_v29 }
 0x248   : > { %3649 = vpow2.f32 %v1697_v31  ;;  %1613 = vperm.xlu0 %3595, %v4494_v55  }
 0x249   : > { %v1699_v21 = vmul.f32 1.442695, %v1633_v63  ;;  %v1701_v25 = vmul.f32 1.442695, %v1634_v28 }
 0x24a   : > { %v1484_v20 = vpop.permute.xlu1 %1483 }
 0x24b   : > { %3651 = vpow2.f32 %v1699_v21  ;;  %v1635_v10 = vsub.f32 %v4187_v56, %v1484_v20  ;;  %v1636_v46 = vsub.f32 -1e+09, %v1484_v20 }
 0x24c   : > { %3653 = vpow2.f32 %v1701_v25 }
 0x24d   : > { %v1703_v47 = vmul.f32 1.442695, %v1635_v10  ;;  %v1705_v18 = vmul.f32 1.442695, %v1636_v46 }
 0x24e   : > { %v1489_v42 = vpop.permute.xlu1 %1488 }
 0x24f   : > { %3655 = vpow2.f32 %v1703_v47  ;;  %v1637_v40 = vsub.f32 %v4191_v61, %v1489_v42  ;;  %v1638_v52 = vsub.f32 -1e+09, %v1489_v42 }
 0x250   : > { %3657 = vpow2.f32 %v1705_v18 }
 0x251   : > { %v3648_v51 = vpop.eup %3647  ;;  %v1707_v29 = vmul.f32 1.442695, %v1637_v40  ;;  %v1709_v31 = vmul.f32 1.442695, %v1638_v52 }
 0x252   : > { %v3650_v55 = vpop.eup %3649  ;;  %v1494_v63 = vpop.permute.xlu0 %1493 }
 0x253   : > { %3659 = vpow2.f32 %v1707_v29  ;;  %v1639_v21 = vsub.f32 %v4197_v2, %v1494_v63  ;;  %v1640_v28 = vsub.f32 -1e+09, %v1494_v63  ;;  %v4504_v56 = vadd.f32 %v3650_v55, %v3648_v51 }
 0x254   : > { %3661 = vpow2.f32 %v1709_v31 }
 0x255   : > { %5125 = vst [vmem:[#allocation36_spill] sm:$0xff] %v4504_v56  ;;  %v3652_v20 = vpop.eup %3651  ;;  %v1711_v25 = vmul.f32 1.442695, %v1639_v21  ;;  %v1713_v10 = vmul.f32 1.442695, %v1640_v28 }
 0x256   : > { %v3654_v46 = vpop.eup %3653  ;;  %v1499_v47 = vpop.permute.xlu0 %1498  ;;  %v2271_v61 = vpack.c.bf16 %v3652_v20, %v3648_v51 }
 0x257   : > { %3663 = vpow2.f32 %v1711_v25  ;;  %v1641_v18 = vsub.f32 %v4201_v7, %v1499_v47  ;;  %v1642_v42 = vsub.f32 -1e+09, %v1499_v47  ;;  %v2272_v40 = vpack.c.bf16 %v3654_v46, %v3650_v55 }
 0x258   : > { %3665 = vpow2.f32 %v1713_v10  ;;  %v4507_v52 = vadd.f32 %v3654_v46, %v3652_v20 }
 0x259   : > { %v3656_v29 = vpop.eup %3655  ;;  %v1715_v2 = vmul.f32 1.442695, %v1641_v18  ;;  %v1717_v63 = vmul.f32 1.442695, %v1642_v42  ;;  %2431 = vmatprep.mubr.bf16.mxu1 %v2272_v40 }
 0x25a   : > { %v3658_v56 = vpop.eup %3657  ;;  %2432 = vmatmul.mubr.bf16.vlgmr.msra.gmra.mrb[0].mxu1 %v2271_v61  ;;  %v1504_v31 = vpop.permute.xlu1 %1503 }
 0x25b   : > { %3667 = vpow2.f32 %v1715_v2  ;;  %v1643_v21 = vsub.f32 %v4207_v12, %v1504_v31  ;;  %v1644_v28 = vsub.f32 -1e+09, %v1504_v31  ;;  %v4510_v51 = vadd.f32 %v3658_v56, %v3656_v29 }
 0x25c   : > { %3669 = vpow2.f32 %v1717_v63 }
 0x25d   : > { %v3660_v7 = vpop.eup %3659  ;;  %v1719_v25 = vmul.f32 1.442695, %v1643_v21  ;;  %v1721_v55 = vmul.f32 1.442695, %v1644_v28 }
 0x25e   : > { %v3662_v10 = vpop.eup %3661  ;;  %v1509_v20 = vpop.permute.xlu1 %1508  ;;  %v2273_v46 = vpack.c.bf16 %v3660_v7, %v3656_v29 }
 0x25f   : > { %3671 = vpow2.f32 %v1719_v25  ;;  %v1645_v47 = vsub.f32 %v4211_v17, %v1509_v20  ;;  %v1646_v18 = vsub.f32 -1e+09, %v1509_v20  ;;  %v2274_v42 = vpack.c.bf16 %v3662_v10, %v3658_v56 }
 0x260   : > { %3673 = vpow2.f32 %v1721_v55  ;;  %v4513_v61 = vadd.f32 %v3662_v10, %v3660_v7 }
 0x261   : > { %v3664_v40 = vpop.eup %3663  ;;  %v1723_v12 = vmul.f32 1.442695, %v1645_v47  ;;  %v1725_v2 = vmul.f32 1.442695, %v1646_v18  ;;  %2439 = vmatprep.mubr.bf16.mxu1 %v2274_v42 }
 0x262   : > { %v3666_v31 = vpop.eup %3665  ;;  %2440 = vmatmul.mubr.bf16.gmra.mrb[4].mxu1 %v2273_v46  ;;  %v1514_v63 = vpop.permute.xlu0 %1513 }
 0x263   : > { %3675 = vpow2.f32 %v1723_v12  ;;  %v1647_v21 = vsub.f32 %v4217_v22, %v1514_v63  ;;  %v1648_v28 = vsub.f32 -1e+09, %v1514_v63  ;;  %v4516_v29 = vadd.f32 %v3666_v31, %v3664_v40 }
 0x264   : > { %3677 = vpow2.f32 %v1725_v2 }
 0x265   : > { %v3668_v17 = vpop.eup %3667  ;;  %v1727_v25 = vmul.f32 1.442695, %v1647_v21  ;;  %v1729_v56 = vmul.f32 1.442695, %v1648_v28 }
 0x266   : > { %v3670_v55 = vpop.eup %3669  ;;  %v1519_v7 = vpop.permute.xlu0 %1518  ;;  %v2275_v10 = vpack.c.bf16 %v3668_v17, %v3664_v40 }
 0x267   : > { %3679 = vpow2.f32 %v1727_v25  ;;  %v1649_v20 = vsub.f32 %v4221_v27, %v1519_v7  ;;  %v1650_v47 = vsub.f32 -1e+09, %v1519_v7  ;;  %v2276_v18 = vpack.c.bf16 %v3670_v55, %v3666_v31 }
 0x268   : > { %3681 = vpow2.f32 %v1729_v56  ;;  %v4519_v46 = vadd.f32 %v3670_v55, %v3668_v17 }
 0x269   : > { %v3672_v42 = vpop.eup %3671  ;;  %v1731_v22 = vmul.f32 1.442695, %v1649_v20  ;;  %v1733_v12 = vmul.f32 1.442695, %v1650_v47  ;;  %2447 = vmatprep.mubr.bf16.mxu1 %v2276_v18 }
 0x26a   : > { %v3674_v63 = vpop.eup %3673  ;;  %2448 = vmatmul.mubr.bf16.gmra.mrb[8].mxu1 %v2275_v10  ;;  %v1524_v2 = vpop.permute.xlu1 %1523 }
 0x26b   : > { %3683 = vpow2.f32 %v1731_v22  ;;  %v1651_v21 = vsub.f32 %v4227_v32, %v1524_v2  ;;  %v1652_v28 = vsub.f32 -1e+09, %v1524_v2  ;;  %v4522_v40 = vadd.f32 %v3674_v63, %v3672_v42 }
 0x26c   : > { %3685 = vpow2.f32 %v1733_v12 }
 0x26d   : > { %v3676_v27 = vpop.eup %3675  ;;  %v1735_v25 = vmul.f32 1.442695, %v1651_v21  ;;  %v1737_v31 = vmul.f32 1.442695, %v1652_v28 }
 0x26e   : > { %v3678_v56 = vpop.eup %3677  ;;  %v1529_v17 = vpop.permute.xlu1 %1528  ;;  %v2277_v55 = vpack.c.bf16 %v3676_v27, %v3672_v42 }
 0x26f   : > { %3687 = vpow2.f32 %v1735_v25  ;;  %v1653_v7 = vsub.f32 %v4231_v37, %v1529_v17  ;;  %v1654_v20 = vsub.f32 -1e+09, %v1529_v17  ;;  %v2278_v47 = vpack.c.bf16 %v3678_v56, %v3674_v63 }
 0x270   : > { %3689 = vpow2.f32 %v1737_v31  ;;  %v4525_v10 = vadd.f32 %v3678_v56, %v3676_v27 }
 0x271   : > { %v3680_v18 = vpop.eup %3679  ;;  %v1739_v32 = vmul.f32 1.442695, %v1653_v7  ;;  %v1741_v22 = vmul.f32 1.442695, %v1654_v20  ;;  %2455 = vmatprep.mubr.bf16.mxu1 %v2278_v47  ;;  %v1375_v47 = vsub.f32 -inf, %v4386_v24 }
 0x272   : > { %v3682_v2 = vpop.eup %3681  ;;  %2456 = vmatmul.mubr.bf16.gmra.mrb[12].mxu1 %v2277_v55 }
 0x273   : > { %3691 = vpow2.f32 %v1739_v32  ;;  %v4527_v12 = vadd.f32 %v3682_v2, %v3680_v18  ;;  %v1377_v32 = vsub.f32 -inf, %v4396_v49 }
 0x274   : > { %3693 = vpow2.f32 %v1741_v22  ;;  %v1378_v22 = vsub.f32 -inf, %v4401_v6  ;;  %v1382_v6 = vsub.f32 -inf, %v4417_v45 }
 0x275   : > { %v3684_v21 = vpop.eup %3683 }
 0x276   : > { %v3686_v42 = vpop.eup %3685  ;;  %v2279_v28 = vpack.c.bf16 %v3684_v21, %v3680_v18  ;;  %v1376_v18 = vsub.f32 -inf, %v4391_v34  ;;  %v1392_v34 = vsub.f32 -inf, %v4453_v26  ;;  %v1386_v26 = vsub.f32 -inf, %v4429_v11 }
 0x277   : > { %v2280_v25 = vpack.c.bf16 %v3686_v42, %v3682_v2  ;;  %v4529_v37 = vadd.f32 %v3686_v42, %v3684_v21  ;;  %v1407_v2 = vmul.f32 1.442695, %v1375_v47  ;;  %v1391_v21 = vsub.f32 -inf, %v4455_v41 }
 0x278   : > { %v1409_v42 = vmul.f32 1.442695, %v1376_v18  ;;  %v1383_v41 = vsub.f32 -inf, %v4420_v53  ;;  %v3984_v47 = vmov 0.0   ;;  %v1393_v53 = vsub.f32 -inf, %v4459_v1 }
 0x279   : > { %v3688_v63 = vpop.eup %3687  ;;  %2463 = vmatprep.mubr.bf16.mxu1 %v2280_v25  ;;  %v1411_v25 = vmul.f32 1.442695, %v1377_v32  ;;  %3695 = vpow2.f32 %v1407_v2  ;;  %v1439_v24 = vmul.f32 1.442695, %v1391_v21  ;;  %431 = vst.msk [vmem:[#allocation4] sm:$0xff] %vm430_vm0, %v3984_v47  ;;  %432 = vst.msk [vmem:[#allocation4 + $0x8] sm:$0xff] %vm430_vm0, %v3984_v47 }
 0x27a   : > { %v3690_v27 = vpop.eup %3689  ;;  %2464 = vmatmul.mubr.bf16.gmra.mrb[16].mxu1 %v2279_v28  ;;  %v1379_v28 = vsub.f32 -inf, %v4406_v15  ;;  %3697 = vpow2.f32 %v1409_v42  ;;  %433 = vst.msk [vmem:[#allocation4 + $0x10] sm:$0xff] %vm430_vm0, %v3984_v47  ;;  %434 = vst.msk [vmem:[#allocation4 + $0x18] sm:$0xff] %vm430_vm0, %v3984_v47  ;;  %v1423_v45 = vmul.f32 1.442695, %v1383_v41  ;;  %v1394_v11 = vsub.f32 -inf, %v4457_v39 }
 0x27b   : > { %v4531_v31 = vadd.f32 %v3690_v27, %v3688_v63  ;;  %3699 = vpow2.f32 %v1411_v25  ;;  %435 = vst.msk [vmem:[#allocation4 + $0x20] sm:$0xff] %vm430_vm0, %v3984_v47  ;;  %436 = vst.msk [vmem:[#allocation4 + $0x28] sm:$0xff] %vm430_vm0, %v3984_v47  ;;  %v1395_v32 = vsub.f32 -inf, %v4462_v35  ;;  %v1396_v2 = vsub.f32 -inf, %v4464_v58 }
 0x27c   : > { %v1415_v49 = vmul.f32 1.442695, %v1379_v28  ;;  %437 = vst.msk [vmem:[#allocation4 + $0x30] sm:$0xff] %vm430_vm0, %v3984_v47  ;;  %438 = vst.msk [vmem:[#allocation4 + $0x38] sm:$0xff] %vm430_vm0, %v3984_v47  ;;  %v1443_v1 = vmul.f32 1.442695, %v1393_v53 }
 0x27d   : > { %v3692_v56 = vpop.eup %3691  ;;  %439 = vst.msk [vmem:[#allocation4 + $0x40] sm:$0xff] %vm430_vm0, %v3984_v47  ;;  %440 = vst.msk [vmem:[#allocation4 + $0x48] sm:$0xff] %vm430_vm0, %v3984_v47  ;;  %v1397_v42 = vsub.f32 -inf, %v4467_v60  ;;  %v1445_v39 = vmul.f32 1.442695, %v1394_v11 }
 0x27e   : > { %v3694_v17 = vpop.eup %3693  ;;  %v2281_v7 = vpack.c.bf16 %v3692_v56, %v3688_v63  ;;  %v1380_v63 = vsub.f32 -inf, %v4411_v30  ;;  %v1385_v30 = vsub.f32 -inf, %v4426_v43  ;;  %441 = vst.msk [vmem:[#allocation4 + $0x50] sm:$0xff] %vm430_vm0, %v3984_v47  ;;  %442 = vst.msk [vmem:[#allocation4 + $0x58] sm:$0xff] %vm430_vm0, %v3984_v47  ;;  %v1447_v35 = vmul.f32 1.442695, %v1395_v32 }
 0x27f   : > { %v2282_v55 = vpack.c.bf16 %v3694_v17, %v3690_v27  ;;  %v4533_v20 = vadd.f32 %v3694_v17, %v3692_v56  ;;  %v1413_v27 = vmul.f32 1.442695, %v1378_v22  ;;  %v1381_v56 = vsub.f32 -inf, %v4414_v36  ;;  %443 = vst.msk [vmem:[#allocation4 + $0x60] sm:$0xff] %vm430_vm0, %v3984_v47  ;;  %444 = vst.msk [vmem:[#allocation4 + $0x68] sm:$0xff] %vm430_vm0, %v3984_v47 }
 0x280   : > { %v1417_v17 = vmul.f32 1.442695, %v1380_v63  ;;  %v1441_v36 = vmul.f32 1.442695, %v1392_v34  ;;  %445 = vst.msk [vmem:[#allocation4 + $0x70] sm:$0xff] %vm430_vm0, %v3984_v47  ;;  %446 = vst.msk [vmem:[#allocation4 + $0x78] sm:$0xff] %vm430_vm0, %v3984_v47 }
 0x281   : > { %2471 = vmatprep.mubr.bf16.mxu1 %v2282_v55  ;;  %3701 = vpow2.f32 %v1413_v27  ;;  %v1419_v15 = vmul.f32 1.442695, %v1381_v56  ;;  %v1421_v55 = vmul.f32 1.442695, %v1382_v6  ;;  %447 = vst.msk [vmem:[#allocation4 + $0x80] sm:$0xff] %vm430_vm0, %v3984_v47  ;;  %448 = vst.msk [vmem:[#allocation4 + $0x88] sm:$0xff] %vm430_vm0, %v3984_v47 }
 0x282   : > { %2472 = vmatmul.mubr.bf16.gmra.mrb[20].mxu1 %v2281_v7  ;;  %v1384_v7 = vsub.f32 -inf, %v4423_v4  ;;  %3703 = vpow2.f32 %v1439_v24  ;;  %449 = vst.msk [vmem:[#allocation4 + $0x90] sm:$0xff] %vm430_vm0, %v3984_v47  ;;  %450 = vst.msk [vmem:[#allocation4 + $0x98] sm:$0xff] %vm430_vm0, %v3984_v47  ;;  %v1427_v18 = vmul.f32 1.442695, %v1385_v30  ;;  %v1398_v63 = vsub.f32 -inf, %v4471_v3 }
 0x283   : > { %3705 = vpow2.f32 %v1415_v49  ;;  %451 = vst.msk [vmem:[#allocation4 + $0xa0] sm:$0xff] %vm430_vm0, %v3984_v47  ;;  %452 = vst.msk [vmem:[#allocation4 + $0xa8] sm:$0xff] %vm430_vm0, %v3984_v47  ;;  %v1429_v22 = vmul.f32 1.442695, %v1386_v26  ;;  %v4588_v21 = vpop.eup %3695  ;;  %v1449_v58 = vmul.f32 1.442695, %v1396_v2 }
 0x284   : > { %453 = vst.msk [vmem:[#allocation4 + $0xb0] sm:$0xff] %vm430_vm0, %v3984_v47  ;;  %454 = vst.msk [vmem:[#allocation4 + $0xb8] sm:$0xff] %vm430_vm0, %v3984_v47  ;;  %3707 = vpow2.f32 %v1417_v17  ;;  %v1425_v43 = vmul.f32 1.442695, %v1384_v7  ;;  %v4591_v28 = vpop.eup %3697  ;;  %v1451_v60 = vmul.f32 1.442695, %v1397_v42 }
 0x285   : > { %455 = vst.msk [vmem:[#allocation4 + $0xc0] sm:$0xff] %vm430_vm0, %v3984_v47  ;;  %456 = vst.msk [vmem:[#allocation4 + $0xc8] sm:$0xff] %vm430_vm0, %v3984_v47  ;;  %3709 = vpow2.f32 %v1419_v15  ;;  %v4594_v25 = vpop.eup %3699  ;;  %v1399_v24 = vsub.f32 -inf, %v4477_v14  ;;  %v1453_v41 = vmul.f32 1.442695, %v1398_v63  ;;  %v1400_v7 = vsub.f32 -inf, %v4475_v59 }
 0x286   : > { %457 = vst.msk [vmem:[#allocation4 + $0xd0] sm:$0xff] %vm430_vm0, %v3984_v47  ;;  %458 = vst.msk [vmem:[#allocation4 + $0xd8] sm:$0xff] %vm430_vm0, %v3984_v47  ;;  %3711 = vpow2.f32 %v1441_v36 }
 0x287   : > { %459 = vst.msk [vmem:[#allocation4 + $0xe0] sm:$0xff] %vm430_vm0, %v3984_v47  ;;  %460 = vst.msk [vmem:[#allocation4 + $0xe8] sm:$0xff] %vm430_vm0, %v3984_v47  ;;  %3713 = vpow2.f32 %v1421_v55  ;;  %v1455_v55 = vmul.f32 1.442695, %v1399_v24 }
 0x288   : > { %461 = vst.msk [vmem:[#allocation4 + $0xf0] sm:$0xff] %vm430_vm0, %v3984_v47  ;;  %462 = vst.msk [vmem:[#allocation4 + $0xf8] sm:$0xff] %vm430_vm0, %v3984_v47  ;;  %3715 = vpow2.f32 %v1423_v45 }
 0x289   : > { %3717 = vpow2.f32 %v1425_v43 }
 0x28a   : > { %3719 = vpow2.f32 %v1427_v18 }
 0x28b   : > { %v4597_v27 = vpop.eup %3701  ;;  %3721 = vpow2.f32 %v1429_v22 }
 0x28c   : > { %v4599_v56 = vpop.eup %3703  ;;  %3723 = vpow2.f32 %v1443_v1 }
 0x28d   : > { %v4602_v49 = vpop.eup %3705  ;;  %3725 = vpow2.f32 %v1445_v39 }
 0x28e   : > { %v4606_v3 = vpop.eup %3707  ;;  %3727 = vpow2.f32 %v1447_v35 }
 0x28f   : > { %v4608_v15 = vpop.eup %3709  ;;  %3729 = vpow2.f32 %v1449_v58 }
 0x290   : > { %v4611_v36 = vpop.eup %3711  ;;  %3731 = vpow2.f32 %v1451_v60 }
 0x291   : > { %5127 = vst [vmem:[#allocation38_spill] sm:$0xff] %v4611_v36  ;;  %v4614_v47 = vpop.eup %3713 }
 0x292   : > { %v4620_v59 = vpop.eup %3715 }
 0x293   : > { %v4582_v4 = vpop.xlane.xlu0 %1341  ;;  %v4623_v11 = vpop.eup %3717 }
 0x294   : > { %5126 = vst [vmem:[#allocation37_spill] sm:$0xff] %v4582_v4  ;;  %1628 = vperm.xlu1 %3596, %v4582_v4   ;;  %v4625_v22 = vpop.eup %3719 }
 0x295   : > { %v4627_v1 = vpop.eup %3721 }
 0x296   : > { %5129 = vst [vmem:[#allocation40_spill] sm:$0xff] %v4627_v1  ;;  %v4631_v63 = vpop.eup %3723 }
 0x297   : > { %5130 = vst [vmem:[#allocation41_spill] sm:$0xff] %v4631_v63  ;;  %v4636_v24 = vpop.eup %3725 }
 0x298   : > { %2081 = vperm.xlu1 %3596, %v4588_v21   ;;  %5131 = vst [vmem:[#allocation42_spill] sm:$0xff] %v4636_v24 }
 0x29b   : > { %v1534_v34 = vpop.permute.xlu0 %1533 }
 0x29c   : > { %v1655_v6 = vsub.f32 %v4237_v44, %v1534_v34  ;;  %v1656_v17 = vsub.f32 -1e+09, %v1534_v34  ;;  %2161 = vperm.xlu1 %3596, %v4599_v56   ;;  %v1402_v44 = vsub.f32 -inf, %v4485_v23  ;;  %v1457_v23 = vmul.f32 1.442695, %v1400_v7 }
 0x29e   : > { %v1743_v30 = vmul.f32 1.442695, %v1655_v6  ;;  %v1745_v14 = vmul.f32 1.442695, %v1656_v17  ;;  %v4638_v17 = vpop.eup %3727 }
 0x29f   : > { %v1539_v26 = vpop.permute.xlu0 %1538  ;;  %5132 = vst [vmem:[#allocation43_spill] sm:$0xff] %v4638_v17 }
 0x2a0   : > { %3733 = vpow2.f32 %v1743_v30  ;;  %v1657_v45 = vsub.f32 %v4241_v50, %v1539_v26  ;;  %v1658_v53 = vsub.f32 -1e+09, %v1539_v26  ;;  %v4617_v43 = vpop.xlane.xlu1 %1338  ;;  %2166 = vperm.xlu1 %3596, %v4611_v36   ;;  %v1461_v50 = vmul.f32 1.442695, %v1402_v44  ;;  %v4640_v30 = vpop.eup %3729 }
 0x2a1   : > { %5128 = vst [vmem:[#allocation39_spill] sm:$0xff] %v4617_v43  ;;  %3735 = vpow2.f32 %v1745_v14  ;;  %1623 = vperm.xlu0 %3595, %v4617_v43   ;;  %5133 = vst [vmem:[#allocation44_spill] sm:$0xff] %v4640_v30 }
 0x2a2   : > { %3737 = vpow2.f32 %v1453_v41  ;;  %v1747_v18 = vmul.f32 1.442695, %v1657_v45  ;;  %v1749_v32 = vmul.f32 1.442695, %v1658_v53 }
 0x2a3   : > { %3739 = vpow2.f32 %v1455_v55  ;;  %v1544_v2 = vpop.permute.xlu0 %1543  ;;  %v4644_v55 = vpop.eup %3731 }
 0x2a4   : > { %3741 = vpow2.f32 %v1747_v18  ;;  %v1659_v42 = vsub.f32 %v4247_v57, %v1544_v2  ;;  %v1660_v39 = vsub.f32 -1e+09, %v1544_v2  ;;  %v1554_v35 = vpop.permute.xlu1 %1553  ;;  %2096 = vperm.xlu1 %3596, %v4597_v27   ;;  %5134 = vst [vmem:[#allocation45_spill] sm:$0xff] %v4644_v55 }
 0x2a5   : > { %3743 = vpow2.f32 %v1749_v32  ;;  %v1663_v58 = vsub.f32 %v4259_v5, %v1554_v35  ;;  %v1664_v60 = vsub.f32 %v4262_v8, %v1554_v35  ;;  %2086 = vperm.xlu0 %3595, %v4591_v28  }
 0x2a6   : > { %3745 = vpow2.f32 %v1457_v23  ;;  %v1751_v34 = vmul.f32 1.442695, %v1659_v42  ;;  %v1753_v6 = vmul.f32 1.442695, %v1660_v39 }
 0x2a7   : > { %3747 = vpow2.f32 %v1461_v50  ;;  %v1759_v57 = vmul.f32 1.442695, %v1663_v58  ;;  %v1761_v41 = vmul.f32 1.442695, %v1664_v60  ;;  %v1549_v7 = vpop.permute.xlu0 %1548 }
 0x2a8   : > { %3749 = vpow2.f32 %v1751_v34  ;;  %v1661_v5 = vsub.f32 %v4250_v62, %v1549_v7  ;;  %v1662_v14 = vsub.f32 -1e+09, %v1549_v7  ;;  %v1579_v8 = vpop.permute.xlu1 %1578  ;;  %2176 = vperm.xlu1 %3596, %v4636_v24  }
 0x2a9   : > { %3751 = vpow2.f32 %v1753_v6  ;;  %v1673_v44 = vsub.f32 %v4296_v33, %v1579_v8  ;;  %v1674_v26 = vsub.f32 %v4301_v38, %v1579_v8  ;;  %2091 = vperm.xlu0 %3595, %v4594_v25  }
 0x2aa   : > { %v3734_v45 = vpop.eup %3733  ;;  %3753 = vpow2.f32 %v1759_v57  ;;  %v1755_v53 = vmul.f32 1.442695, %v1661_v5  ;;  %v1757_v23 = vmul.f32 1.442695, %v1662_v14 }
 0x2ab   : > { %v3736_v18 = vpop.eup %3735  ;;  %3755 = vpow2.f32 %v1761_v41  ;;  %v1779_v62 = vmul.f32 1.442695, %v1673_v44  ;;  %v1781_v32 = vmul.f32 1.442695, %v1674_v26  ;;  %v1559_v50 = vpop.permute.xlu0 %1558 }
 0x2ac   : > { %v4649_v2 = vpop.eup %3737  ;;  %3757 = vpow2.f32 %v1755_v53  ;;  %v1665_v42 = vsub.f32 %v4264_v9, %v1559_v50  ;;  %v1666_v33 = vsub.f32 %v4269_v13, %v1559_v50  ;;  %v1589_v39 = vpop.permute.xlu1 %1588  ;;  %2106 = vperm.xlu1 %3596, %v4606_v3   ;;  %v4654_v38 = vadd.f32 %v3736_v18, %v3734_v45 }
 0x2ad   : > { %5135 = vst [vmem:[#allocation46_spill] sm:$0xff] %v4649_v2  ;;  %v4656_v35 = vpop.eup %3739  ;;  %3759 = vpow2.f32 %v1757_v23  ;;  %v1677_v58 = vsub.f32 %v4312_v48, %v1589_v39  ;;  %v1678_v60 = vsub.f32 %v4317_v54, %v1589_v39  ;;  %2171 = vperm.xlu0 %3595, %v4631_v63   ;;  %v5139_v23 = vld [vmem:[#allocation16_spill] sm:$0xff] }
 0x2ae   : > { %5136 = vst [vmem:[#allocation47_spill] sm:$0xff] %v4656_v35  ;;  %v3742_v34 = vpop.eup %3741  ;;  %3761 = vpow2.f32 %v1779_v62  ;;  %v1763_v6 = vmul.f32 1.442695, %v1665_v42  ;;  %v1765_v9 = vmul.f32 1.442695, %v1666_v33 }
 0x2af   : > { %v3744_v57 = vpop.eup %3743  ;;  %3763 = vpow2.f32 %v1781_v32  ;;  %v1787_v13 = vmul.f32 1.442695, %v1677_v58  ;;  %v1789_v41 = vmul.f32 1.442695, %v1678_v60  ;;  %v1564_v7 = vpop.permute.xlu0 %1563  ;;  %v2283_v5 = vpack.c.bf16 %v3742_v34, %v3734_v45  ;;  %v5141_v60 = vld [vmem:[#allocation9_spill] sm:$0xff] }
 0x2b0   : > { %v4661_v14 = vpop.eup %3745  ;;  %3765 = vpow2.f32 %v1763_v6  ;;  %v1667_v8 = vsub.f32 %v4275_v16, %v1564_v7  ;;  %v1668_v48 = vsub.f32 %v4278_v19, %v1564_v7  ;;  %v1599_v54 = vpop.permute.xlu1 %1598  ;;  %2186 = vperm.xlu1 %3596, %v4640_v30   ;;  %v2284_v44 = vpack.c.bf16 %v3744_v57, %v3736_v18 }
 0x2b1   : > { %5137 = vst [vmem:[#allocation48_spill] sm:$0xff] %v4661_v14  ;;  %v4666_v26 = vpop.eup %3747  ;;  %3767 = vpow2.f32 %v1765_v9  ;;  %v1681_v53 = vsub.f32 %v4328_v0, %v1599_v54  ;;  %v1682_v62 = vsub.f32 %v5139_v23, %v1599_v54  ;;  %2101 = vperm.xlu0 %3595, %v4602_v49   ;;  %v4671_v45 = vadd.f32 %v3744_v57, %v3742_v34  ;;  %v5140_v0 = vld [vmem:[#allocation8_spill] sm:$0xff] }
 0x2b2   : > { %5138 = vst [vmem:[#allocation49_spill] sm:$0xff] %v4666_v26  ;;  %v3750_v32 = vpop.eup %3749  ;;  %3769 = vpow2.f32 %v1787_v13  ;;  %v1767_v16 = vmul.f32 1.442695, %v1667_v8  ;;  %v1769_v50 = vmul.f32 1.442695, %v1668_v48  ;;  %2479 = vmatprep.mubr.bf16.mxu1 %v2284_v44  ;;  %v5142_v13 = vld [vmem:[#allocation33_spill] sm:$0xff] }
 0x2b3   : > { %v3752_v19 = vpop.eup %3751  ;;  %3771 = vpow2.f32 %v1789_v41  ;;  %v1795_v42 = vmul.f32 1.442695, %v1681_v53  ;;  %v1797_v18 = vmul.f32 1.442695, %v1682_v62  ;;  %2480 = vmatmul.mubr.bf16.gmra.mrb[24].mxu1 %v2283_v5  ;;  %v1569_v33 = vpop.permute.xlu0 %1568  ;;  %v1401_v7 = vsub.f32 -inf, %v5142_v13  ;;  %v5143_v41 = vld [vmem:[#allocation19_spill] sm:$0xff] }
 0x2b4   : > { %v4673_v39 = vpop.eup %3753  ;;  %3773 = vpow2.f32 %v1767_v16  ;;  %v1669_v58 = vsub.f32 %v5140_v0, %v1569_v33  ;;  %v1670_v6 = vsub.f32 %v5141_v60, %v1569_v33  ;;  %v1609_v34 = vpop.permute.xlu1 %1608  ;;  %2116 = vperm.xlu1 %3596, %v4614_v47   ;;  %v4678_v9 = vadd.f32 %v3752_v19, %v3750_v32  ;;  %v5144_v5 = vld [vmem:[#allocation20_spill] sm:$0xff]  ;;  %v5145_v13 = vld [vmem:[#allocation10_spill] sm:$0xff] }
 0x2b5   : > { %v3756_v57 = vpop.eup %3755  ;;  %3775 = vpow2.f32 %v1769_v50  ;;  %v1685_v8 = vsub.f32 %v5143_v41, %v1609_v34  ;;  %v1686_v48 = vsub.f32 %v5144_v5, %v1609_v34  ;;  %2181 = vperm.xlu0 %3595, %v4638_v17   ;;  %v5146_v41 = vld [vmem:[#allocation11_spill] sm:$0xff] }
 0x2b6   : > { %v3758_v54 = vpop.eup %3757  ;;  %3777 = vpow2.f32 %v1795_v42  ;;  %v1771_v44 = vmul.f32 1.442695, %v1669_v58  ;;  %v1773_v53 = vmul.f32 1.442695, %v1670_v6  ;;  %v4685_v23 = vadd.f32 %v3756_v57, %v4673_v39  ;;  %v5147_v6 = vld [vmem:[#allocation23_spill] sm:$0xff] }
 0x2b7   : > { %v3760_v62 = vpop.eup %3759  ;;  %3779 = vpow2.f32 %v1797_v18  ;;  %v1803_v16 = vmul.f32 1.442695, %v1685_v8  ;;  %v1805_v33 = vmul.f32 1.442695, %v1686_v48  ;;  %v1574_v0 = vpop.permute.xlu0 %1573  ;;  %v2285_v60 = vpack.c.bf16 %v3758_v54, %v3750_v32  ;;  %v5148_v8 = vld [vmem:[#allocation24_spill] sm:$0xff] }
 0x2b8   : > { %v4687_v50 = vpop.eup %3761  ;;  %3781 = vpow2.f32 %v1771_v44  ;;  %v1671_v34 = vsub.f32 %v5145_v13, %v1574_v0  ;;  %v1672_v5 = vsub.f32 %v5146_v41, %v1574_v0  ;;  %v1619_v4 = vpop.permute.xlu1 %1618  ;;  %2196 = vperm.xlu1 %3596, %v4649_v2   ;;  %v2286_v42 = vpack.c.bf16 %v3760_v62, %v3752_v19 }
 0x2b9   : > { %v4692_v58 = vpop.eup %3763  ;;  %3783 = vpow2.f32 %v1773_v53  ;;  %v1689_v18 = vsub.f32 %v5147_v6, %v1619_v4  ;;  %v1690_v48 = vsub.f32 %v5148_v8, %v1619_v4  ;;  %2111 = vperm.xlu0 %3595, %v4608_v15   ;;  %v4697_v32 = vadd.f32 %v3760_v62, %v3758_v54  ;;  %v5149_v54 = vld [vmem:[#allocation12_spill] sm:$0xff] }
 0x2ba   : > { %v3766_v44 = vpop.eup %3765  ;;  %3785 = vpow2.f32 %v1803_v16  ;;  %v1775_v13 = vmul.f32 1.442695, %v1671_v34  ;;  %v1777_v43 = vmul.f32 1.442695, %v1672_v5  ;;  %2487 = vmatprep.mubr.bf16.mxu1 %v2286_v42  ;;  %v4701_v0 = vadd.f32 %v4692_v58, %v4687_v50  ;;  %v5150_v16 = vld [vmem:[#allocation13_spill] sm:$0xff] }
 0x2bb   : > { %v3768_v19 = vpop.eup %3767  ;;  %3787 = vpow2.f32 %v1805_v33  ;;  %v1811_v53 = vmul.f32 1.442695, %v1689_v18  ;;  %v1813_v41 = vmul.f32 1.442695, %v1690_v48  ;;  %2488 = vmatmul.mubr.bf16.gmra.mrb[28].mxu1 %v2285_v60  ;;  %v1584_v6 = vpop.permute.xlu0 %1583  ;;  %v2287_v4 = vpack.c.bf16 %v3766_v44, %v4673_v39 }
 0x2bc   : > { %v4704_v8 = vpop.eup %3769  ;;  %3789 = vpow2.f32 %v1775_v13  ;;  %v1675_v62 = vsub.f32 %v5149_v54, %v1584_v6  ;;  %v1676_v34 = vsub.f32 %v5150_v16, %v1584_v6  ;;  %2126 = vperm.xlu1 %3596, %v4623_v11   ;;  %v2288_v5 = vpack.c.bf16 %v3768_v19, %v3756_v57  ;;  %v5152_v54 = vld [vmem:[#allocation15_spill] sm:$0xff] }
 0x2bd   : > { %v4709_v42 = vpop.eup %3771  ;;  %v1459_v2 = vmul.f32 1.442695, %v1401_v7  ;;  %3791 = vpow2.f32 %v1777_v43  ;;  %2191 = vperm.xlu0 %3595, %v4644_v55   ;;  %v4712_v33 = vadd.f32 %v3768_v19, %v3766_v44  ;;  %v5151_v43 = vld [vmem:[#allocation14_spill] sm:$0xff] }
 0x2be   : > { %v3774_v60 = vpop.eup %3773  ;;  %3793 = vpow2.f32 %v1811_v53  ;;  %v1783_v39 = vmul.f32 1.442695, %v1675_v62  ;;  %v1785_v18 = vmul.f32 1.442695, %v1676_v34  ;;  %2495 = vmatprep.mubr.bf16.mxu1 %v2288_v5  ;;  %v4716_v48 = vadd.f32 %v4709_v42, %v4704_v8  ;;  %v5154_v55 = vld [vmem:[#allocation18_spill] sm:$0xff] }
 0x2bf   : > { %v3776_v13 = vpop.eup %3775  ;;  %3795 = vpow2.f32 %v1813_v41  ;;  %v1594_v57 = vpop.permute.xlu0 %1593 }
 0x2c0   : > { %v4718_v6 = vpop.eup %3777  ;;  %3797 = vpow2.f32 %v1783_v39  ;;  %v1679_v7 = vsub.f32 %v5151_v43, %v1594_v57  ;;  %v1680_v44 = vsub.f32 %v5152_v54, %v1594_v57  ;;  %2206 = vperm.xlu1 %3596, %v4661_v14   ;;  %v4723_v19 = vadd.f32 %v3776_v13, %v3774_v60  ;;  %v5153_v54 = vld [vmem:[#allocation17_spill] sm:$0xff] }
 0x2c1   : > { %v4725_v53 = vpop.eup %3779  ;;  %3799 = vpow2.f32 %v1785_v18  ;;  %2121 = vperm.xlu0 %3595, %v4620_v59  }
 0x2c2   : > { %v3782_v62 = vpop.eup %3781  ;;  %3801 = vpow2.f32 %v1459_v2  ;;  %v1791_v41 = vmul.f32 1.442695, %v1679_v7  ;;  %v1793_v16 = vmul.f32 1.442695, %v1680_v44  ;;  %v4730_v34 = vadd.f32 %v4725_v53, %v4718_v6 }
 0x2c3   : > { %v3784_v5 = vpop.eup %3783  ;;  %2496 = vmatmul.mubr.bf16.gmra.mrb[32].mxu1 %v2287_v4  ;;  %v1604_v39 = vpop.permute.xlu0 %1603  ;;  %v2289_v57 = vpack.c.bf16 %v3782_v62, %v3774_v60 }
 0x2c4   : > { %v3786_v43 = vpop.eup %3785  ;;  %3803 = vpow2.f32 %v1791_v41  ;;  %v1683_v14 = vsub.f32 %v5153_v54, %v1604_v39  ;;  %v1684_v18 = vsub.f32 %v5154_v55, %v1604_v39  ;;  %2136 = vperm.xlu1 %3596, %v4627_v1   ;;  %v2290_v30 = vpack.c.bf16 %v3784_v5, %v3776_v13  ;;  %v5155_v39 = vld [vmem:[#allocation21_spill] sm:$0xff]  ;;  %v5157_v1 = vld [vmem:[#allocation22_spill] sm:$0xff] }
 0x2c5   : > { %v3788_v2 = vpop.eup %3787  ;;  %3805 = vpow2.f32 %v1793_v16  ;;  %2201 = vperm.xlu0 %3595, %v4656_v35   ;;  %v4736_v7 = vadd.f32 %v3784_v5, %v3782_v62 }
 0x2c6   : > { %v3790_v44 = vpop.eup %3789  ;;  %v1799_v17 = vmul.f32 1.442695, %v1683_v14  ;;  %v1801_v4 = vmul.f32 1.442695, %v1684_v18  ;;  %2503 = vmatprep.mubr.bf16.mxu1 %v2290_v30  ;;  %v4738_v60 = vadd.f32 %v3788_v2, %v3786_v43 }
 0x2c7   : > { %v3792_v41 = vpop.eup %3791  ;;  %v1614_v24 = vpop.permute.xlu0 %1613  ;;  %v2291_v54 = vpack.c.bf16 %v4687_v50, %v3790_v44 }
 0x2c8   : > { %v3794_v55 = vpop.eup %3793  ;;  %3807 = vpow2.f32 %v1799_v17  ;;  %v1687_v13 = vsub.f32 %v5155_v39, %v1614_v24  ;;  %2216 = vperm.xlu1 %3596, %v4666_v26   ;;  %v1947_v62 = vadd.f32 %v3792_v41, %v3790_v44  ;;  %v2292_v30 = vpack.c.bf16 %v4692_v58, %v3792_v41 }
 0x2c9   : > { %v3796_v16 = vpop.eup %3795  ;;  %3809 = vpow2.f32 %v1801_v4  ;;  %2131 = vperm.xlu0 %3595, %v4625_v22   ;;  %v1688_v36 = vsub.f32 %v5157_v1, %v1614_v24  ;;  %v5161_v1 = vld [vmem:[#allocation25_spill] sm:$0xff]  ;;  %v5162_v24 = vld [vmem:[#allocation31_spill] sm:$0xff] }
 0x2ca   : > { %v3798_v14 = vpop.eup %3797  ;;  %v1807_v5 = vmul.f32 1.442695, %v1687_v13  ;;  %v4745_v18 = vadd.f32 %v3796_v16, %v3794_v55 }
 0x2cb   : > { %v3800_v35 = vpop.eup %3799  ;;  %2504 = vmatmul.mubr.bf16.gmra.mrb[36].mxu1 %v2289_v57  ;;  %v2293_v50 = vpack.c.bf16 %v4704_v8, %v3798_v14 }
 0x2cc   : > { %v4748_v17 = vpop.eup %3801  ;;  %3811 = vpow2.f32 %v1807_v5  ;;  %2511 = vmatprep.mubr.bf16.mxu1 %v2292_v30  ;;  %v1953_v39 = vadd.f32 %v3800_v35, %v3798_v14  ;;  %v2294_v58 = vpack.c.bf16 %v4709_v42, %v3800_v35  ;;  %v1809_v14 = vmul.f32 1.442695, %v1688_v36  ;;  %v5158_v42 = vld [vmem:[#allocation36_spill] sm:$0xff] }
 0x2cd   : > { %5156 = vst [vmem:[#allocation16_spill] sm:$0xff] %v4748_v17  ;;  %2211 = vperm.xlu0 %3595, %v4748_v17  }
 0x2ce   : > { %v3804_v4 = vpop.eup %3803  ;;  %3813 = vpow2.f32 %v1809_v14  ;;  %v2050_v14 = vld [vmem:[#allocation4 + $0x18] sm:$0xff] }
 0x2cf   : > { %v3806_v26 = vpop.eup %3805  ;;  %v2295_v44 = vpack.c.bf16 %v4718_v6, %v3804_v4 }
 0x2d0   : > { %v1959_v13 = vadd.f32 %v3806_v26, %v3804_v4  ;;  %v2296_v17 = vpack.c.bf16 %v4725_v53, %v3806_v26 }
 0x2d2   : > { %v3808_v63 = vpop.eup %3807 }
 0x2d3   : > { %v3810_v41 = vpop.eup %3809  ;;  %2512 = vmatmul.mubr.bf16.gmra.mrb[40].mxu1 %v2291_v54  ;;  %v2297_v57 = vpack.c.bf16 %v3786_v43, %v3808_v63 }
 0x2d4   : > { %2519 = vmatprep.mubr.bf16.mxu1 %v2294_v58  ;;  %v1965_v8 = vadd.f32 %v3810_v41, %v3808_v63  ;;  %v2298_v6 = vpack.c.bf16 %v3788_v2, %v3810_v41  ;;  %v2048_v2 = vld [vmem:[#allocation4 + $0x8] sm:$0xff] }
 0x2d6   : > { %v3812_v5 = vpop.eup %3811 }
 0x2d7   : > { %v2299_v30 = vpack.c.bf16 %v3794_v55, %v3812_v5 }
 0x2d8   : > { %v3814_v4 = vpop.eup %3813 }
 0x2d9   : > { %v2300_v35 = vpack.c.bf16 %v3796_v16, %v3814_v4 }
 0x2db   : > { %2520 = vmatmul.mubr.bf16.gmra.mrb[44].mxu1 %v2293_v50 }
 0x2dc   : > { %2527 = vmatprep.mubr.bf16.mxu1 %v2296_v17 }
 0x2e3   : > { %2528 = vmatmul.mubr.bf16.gmra.mrb[48].mxu1 %v2295_v44 }
 0x2e4   : > { %2535 = vmatprep.mubr.bf16.mxu1 %v2298_v6 }
 0x2eb   : > { %2536 = vmatmul.mubr.bf16.gmra.mrb[52].mxu1 %v2297_v57 }
 0x2ec   : > { %2543 = vmatprep.mubr.bf16.mxu1 %v2300_v35  ;;  %1888 = vadd.xlane.f32.xlu0 %v5158_v42 }
 0x2ed   : > { %1891 = vadd.xlane.f32.xlu1 %v4507_v52 }
 0x2f0   : > { %1897 = vadd.xlane.f32.xlu0 %v4513_v61 }
 0x2f1   : > { %1894 = vadd.xlane.f32.xlu1 %v4510_v51  ;;  %v5159_v51 = vld [vmem:[#allocation26_spill] sm:$0xff] }
 0x2f3   : > { %2544 = vmatmul.mubr.bf16.gmra.mrb[56].mxu1 %v2299_v30 }
 0x2f4   : > { %1903 = vadd.xlane.f32.xlu0 %v4519_v46 }
 0x2f5   : > { %1900 = vadd.xlane.f32.xlu1 %v4516_v29  ;;  %v5160_v29 = vld [vmem:[#allocation27_spill] sm:$0xff] }
 0x2f8   : > { %1909 = vadd.xlane.f32.xlu0 %v4525_v10 }
 0x2f9   : > { %1906 = vadd.xlane.f32.xlu1 %v4522_v40 }
 0x2fc   : > { %1915 = vadd.xlane.f32.xlu0 %v4529_v37 }
 0x2fd   : > { %1912 = vadd.xlane.f32.xlu1 %v4527_v12 }
 0x300   : > { %1921 = vadd.xlane.f32.xlu0 %v4533_v20 }
 0x301   : > { %1918 = vadd.xlane.f32.xlu1 %v4531_v31  ;;  %v1971_v31 = vadd.f32 %v3814_v4, %v3812_v5  ;;  %v2049_v5 = vld [vmem:[#allocation4 + $0x10] sm:$0xff] }
 0x304   : > { %1927 = vadd.xlane.f32.xlu0 %v4671_v45 }
 0x305   : > { %1924 = vadd.xlane.f32.xlu1 %v4654_v38 }
 0x308   : > { %1933 = vadd.xlane.f32.xlu0 %v4697_v32 }
 0x309   : > { %1930 = vadd.xlane.f32.xlu1 %v4678_v9 }
 0x30c   : > { %1936 = vadd.xlane.f32.xlu0 %v4685_v23 }
 0x30d   : > { %1942 = vadd.xlane.f32.xlu1 %v4723_v19  ;;  %v2047_v19 = vld [vmem:[#allocation4] sm:$0xff] }
 0x310   : > { %1939 = vadd.xlane.f32.xlu0 %v4712_v33 }
 0x311   : > { %1948 = vadd.xlane.f32.xlu1 %v1947_v62 }
 0x313   : > { %v1629_v52 = vpop.permute.xlu1 %1628 }
 0x314   : > { %v1693_v61 = vsub.f32 %v5159_v51, %v1629_v52  ;;  %1945 = vadd.xlane.f32.xlu0 %v4736_v7  ;;  %v1694_v46 = vsub.f32 %v5160_v29, %v1629_v52 }
 0x315   : > { %1954 = vadd.xlane.f32.xlu1 %v1953_v39 }
 0x316   : > { %v1819_v10 = vmul.f32 1.442695, %v1693_v61  ;;  %v1821_v12 = vmul.f32 1.442695, %v1694_v46 }
 0x317   : > { %v2082_v40 = vpop.permute.xlu1 %2081 }
 0x318   : > { %1951 = vadd.xlane.f32.xlu0 %v4701_v0  ;;  %3815 = vpow2.f32 %v1819_v10  ;;  %v2239_v54 = vmul.f32 %v2082_v40, %v2047_v19 }
 0x319   : > { %1960 = vadd.xlane.f32.xlu1 %v1959_v13  ;;  %3817 = vpow2.f32 %v1821_v12  ;;  %v2051_v12 = vld [vmem:[#allocation4 + $0x20] sm:$0xff] }
 0x31b   : > { %v4778_v37 = vpop.permute.xlu1 %2161 }
 0x31c   : > { %1957 = vadd.xlane.f32.xlu0 %v4716_v48 }
 0x31d   : > { %1966 = vadd.xlane.f32.xlu1 %v1965_v8 }
 0x31f   : > { %v4781_v20 = vpop.permute.xlu1 %2166 }
 0x320   : > { %1963 = vadd.xlane.f32.xlu0 %v4730_v34  ;;  %v1624_v36 = vpop.permute.xlu0 %1623 }
 0x321   : > { %1972 = vadd.xlane.f32.xlu1 %v1971_v31  ;;  %v1691_v63 = vsub.f32 %v5161_v1, %v1624_v36  ;;  %v1692_v38 = vsub.f32 %v5162_v24, %v1624_v36  ;;  %v2052_v1 = vld [vmem:[#allocation4 + $0x28] sm:$0xff] }
 0x322   : > { %v3816_v23 = vpop.eup %3815 }
 0x323   : > { %v1815_v26 = vmul.f32 1.442695, %v1691_v63  ;;  %v1817_v45 = vmul.f32 1.442695, %v1692_v38  ;;  %v2097_v32 = vpop.permute.xlu1 %2096  ;;  %v3818_v0 = vpop.eup %3817 }
 0x324   : > { %1969 = vadd.xlane.f32.xlu0 %v4738_v60  ;;  %v2087_v9 = vpop.permute.xlu0 %2086  ;;  %v1980_v48 = vadd.f32 %v3818_v0, %v3816_v23  ;;  %v2242_v29 = vmul.f32 %v2097_v32, %v2050_v14 }
 0x325   : > { %3819 = vpow2.f32 %v1815_v26 }
 0x326   : > { %3821 = vpow2.f32 %v1817_v45 }
 0x327   : > { %v4788_v53 = vpop.permute.xlu1 %2176 }
 0x328   : > { %1975 = vadd.xlane.f32.xlu0 %v4745_v18  ;;  %v2092_v33 = vpop.permute.xlu0 %2091  ;;  %v2240_v18 = vmul.f32 %v2087_v9, %v2048_v2 }
 0x329   : > { %v2241_v35 = vmul.f32 %v2092_v33, %v2049_v5 }
 0x32b   : > { %v2107_v41 = vpop.permute.xlu1 %2106 }
 0x32c   : > { %1981 = vadd.xlane.f32.xlu0 %v1980_v48  ;;  %v4790_v34 = vpop.permute.xlu0 %2171 }
 0x32d   : > { %v3404_v43 = vpop.f32.mrb[0].mxu1 }
 0x32e   : > { %v3405_v7 = vpop.f32.mrb[1].mxu1 }
 0x32f   : > { %v3820_v60 = vpop.eup %3819  ;;  %v3406_v55 = vadd.f32 %v3405_v7, %v3404_v43  ;;  %v3407_v16 = vpop.f32.mrb[2].mxu1  ;;  %v2053_v43 = vld [vmem:[#allocation4 + $0x30] sm:$0xff]  ;;  %v2054_v7 = vld [vmem:[#allocation4 + $0x38] sm:$0xff] }
 0x330   : > { %v3822_v62 = vpop.eup %3821  ;;  %v3408_v50 = vpop.f32.mrb[3].mxu1  ;;  %v2301_v39 = vpack.c.bf16 %v3816_v23, %v3820_v60  ;;  %v2244_v23 = vmul.f32 %v2107_v41, %v2052_v1 }
 0x331   : > { %v2102_v17 = vpop.permute.xlu0 %2101  ;;  %v2560_v44 = vadd.f32 %v3406_v55, %v2239_v54  ;;  %v3409_v13 = vadd.f32 %v3408_v50, %v3407_v16  ;;  %v2302_v58 = vpack.c.bf16 %v3818_v0, %v3822_v62  ;;  %v1977_v57 = vadd.f32 %v3822_v62, %v3820_v60  ;;  %v4796_v51 = vpop.permute.xlu1 %2186 }
 0x332   : > { %v2243_v38 = vmul.f32 %v2102_v17, %v2051_v12 }
 0x333   : > { %2592 = vst.msk [vmem:[#allocation4] sm:$0xff] %vm430_vm0, %v2560_v44  ;;  %v2561_v8 = vadd.f32 %v3409_v13, %v2240_v18  ;;  %2551 = vmatprep.mubr.bf16.mxu1 %v2302_v58  ;;  %1978 = vadd.xlane.f32.xlu1 %v1977_v57  ;;  %v2055_v58 = vld [vmem:[#allocation4 + $0x40] sm:$0xff]  ;;  %v2056_v57 = vld [vmem:[#allocation4 + $0x48] sm:$0xff] }
 0x334   : > { %2552 = vmatmul.mubr.bf16.gmra.mrb[60].mxu1 %v2301_v39 }
 0x335   : > { %2593 = vst.msk [vmem:[#allocation4 + $0x8] sm:$0xff] %vm430_vm0, %v2561_v8  ;;  %v3410_v30 = vpop.f32.mrb[4].mxu1  ;;  %v4794_v6 = vpop.permute.xlu0 %2181 }
 0x336   : > { %v3411_v4 = vpop.f32.mrb[5].mxu1  ;;  %v2117_v63 = vpop.permute.xlu1 %2116 }
 0x337   : > { %v3412_v42 = vadd.f32 %v3411_v4, %v3410_v30  ;;  %v3413_v52 = vpop.f32.mrb[6].mxu1  ;;  %v2246_v17 = vmul.f32 %v2117_v63, %v2054_v7 }
 0x338   : > { %v3414_v61 = vpop.f32.mrb[7].mxu1 }
 0x339   : > { %v2562_v46 = vadd.f32 %v3412_v42, %v2241_v35  ;;  %v3415_v40 = vadd.f32 %v3414_v61, %v3413_v52  ;;  %v2112_v31 = vpop.permute.xlu0 %2111 }
 0x33a   : > { %v4803_v19 = vpop.permute.xlu1 %2196  ;;  %v2245_v54 = vmul.f32 %v2112_v31, %v2053_v43  ;;  %v2058_v31 = vld [vmem:[#allocation4 + $0x58] sm:$0xff]  ;;  %v1855_v43 = vmul.f32 0.0, %v4588_v21  ;;  %v1859_v21 = vmul.f32 0.0, %v4602_v49  ;;  %v1864_v49 = vmul.f32 0.0, %v4623_v11 }
 0x33b   : > { %2594 = vst.msk [vmem:[#allocation4 + $0x10] sm:$0xff] %vm430_vm0, %v2562_v46  ;;  %v2563_v10 = vadd.f32 %v3415_v40, %v2242_v29  ;;  %v2057_v40 = vld [vmem:[#allocation4 + $0x50] sm:$0xff] }
 0x33d   : > { %2595 = vst.msk [vmem:[#allocation4 + $0x18] sm:$0xff] %vm430_vm0, %v2563_v10  ;;  %v3416_v36 = vpop.f32.mrb[8].mxu1  ;;  %v4800_v33 = vpop.permute.xlu0 %2191 }
 0x33e   : > { %v3417_v24 = vpop.f32.mrb[9].mxu1  ;;  %v2127_v44 = vpop.permute.xlu1 %2126 }
 0x33f   : > { %v3418_v26 = vadd.f32 %v3417_v24, %v3416_v36  ;;  %v3419_v45 = vpop.f32.mrb[10].mxu1  ;;  %v2248_v52 = vmul.f32 %v2127_v44, %v2056_v57  ;;  %v1860_v44 = vmul.f32 0.0, %v4606_v3  ;;  %v1862_v57 = vmul.f32 0.0, %v4614_v47 }
 0x340   : > { %v3420_v9 = vpop.f32.mrb[11].mxu1  ;;  %v1863_v47 = vmul.f32 0.0, %v4620_v59 }
 0x341   : > { %v2564_v0 = vadd.f32 %v3418_v26, %v2243_v38  ;;  %v3421_v32 = vadd.f32 %v3420_v9, %v3419_v45  ;;  %v2122_v62 = vpop.permute.xlu0 %2121 }
 0x342   : > { %v2247_v30 = vmul.f32 %v2122_v62, %v2055_v58  ;;  %v4810_v35 = vpop.permute.xlu1 %2206  ;;  %v1857_v62 = vmul.f32 0.0, %v4594_v25  ;;  %v1861_v25 = vmul.f32 0.0, %v4608_v15 }
 0x343   : > { %2596 = vst.msk [vmem:[#allocation4 + $0x20] sm:$0xff] %vm430_vm0, %v2564_v0  ;;  %v2565_v48 = vadd.f32 %v3421_v32, %v2244_v23 }
 0x345   : > { %2597 = vst.msk [vmem:[#allocation4 + $0x28] sm:$0xff] %vm430_vm0, %v2565_v48  ;;  %v3422_v2 = vpop.f32.mrb[12].mxu1  ;;  %v4808_v8 = vpop.permute.xlu0 %2201 }
 0x346   : > { %v3423_v60 = vpop.f32.mrb[13].mxu1  ;;  %v2137_v36 = vpop.permute.xlu1 %2136 }
 0x347   : > { %v3424_v55 = vadd.f32 %v3423_v60, %v3422_v2  ;;  %v3425_v16 = vpop.f32.mrb[14].mxu1  ;;  %v2250_v45 = vmul.f32 %v2137_v36, %v2058_v31  ;;  %v1856_v2 = vmul.f32 0.0, %v4591_v28 }
 0x348   : > { %v3426_v50 = vpop.f32.mrb[15].mxu1 }
 0x349   : > { %v2566_v39 = vadd.f32 %v3424_v55, %v2245_v54  ;;  %v3427_v18 = vadd.f32 %v3426_v50, %v3425_v16  ;;  %v2132_v10 = vpop.permute.xlu0 %2131  ;;  %v1858_v16 = vmul.f32 0.0, %v4597_v27 }
 0x34a   : > { %v2249_v63 = vmul.f32 %v2132_v10, %v2057_v40  ;;  %v4818_v48 = vpop.permute.xlu1 %2216 }
 0x34b   : > { %2598 = vst.msk [vmem:[#allocation4 + $0x30] sm:$0xff] %vm430_vm0, %v2566_v39  ;;  %v2567_v13 = vadd.f32 %v3427_v18, %v2246_v17 }
 0x34d   : > { %2599 = vst.msk [vmem:[#allocation4 + $0x38] sm:$0xff] %vm430_vm0, %v2567_v13  ;;  %v3428_v41 = vpop.f32.mrb[16].mxu1  ;;  %v4816_v32 = vpop.permute.xlu0 %2211 }
 0x34e   : > { %v3429_v5 = vpop.f32.mrb[17].mxu1 }
 0x34f   : > { %v3430_v14 = vadd.f32 %v3429_v5, %v3428_v41  ;;  %v3431_v4 = vpop.f32.mrb[18].mxu1 }
 0x350   : > { %v3432_v42 = vpop.f32.mrb[19].mxu1 }
 0x351   : > { %v2568_v61 = vadd.f32 %v3430_v14, %v2247_v30  ;;  %v3433_v29 = vadd.f32 %v3432_v42, %v3431_v4 }
 0x353   : > { %2600 = vst.msk [vmem:[#allocation4 + $0x40] sm:$0xff] %vm430_vm0, %v2568_v61  ;;  %v2569_v46 = vadd.f32 %v3433_v29, %v2248_v52 }
 0x355   : > { %2601 = vst.msk [vmem:[#allocation4 + $0x48] sm:$0xff] %vm430_vm0, %v2569_v46  ;;  %v3434_v12 = vpop.f32.mrb[20].mxu1 }
 0x356   : > { %v3435_v1 = vpop.f32.mrb[21].mxu1 }
 0x357   : > { %v3436_v24 = vadd.f32 %v3435_v1, %v3434_v12  ;;  %v3437_v38 = vpop.f32.mrb[22].mxu1 }
 0x358   : > { %v3438_v26 = vpop.f32.mrb[23].mxu1 }
 0x359   : > { %v2570_v9 = vadd.f32 %v3436_v24, %v2249_v63  ;;  %v3439_v23 = vadd.f32 %v3438_v26, %v3437_v38 }
 0x35b   : > { %2602 = vst.msk [vmem:[#allocation4 + $0x50] sm:$0xff] %vm430_vm0, %v2570_v9  ;;  %v2571_v0 = vadd.f32 %v3439_v23, %v2250_v45  ;;  %v5163_v45 = vld [vmem:[#allocation29_spill] sm:$0xff]  ;;  %v2063_v23 = vld [vmem:[#allocation4 + $0x80] sm:$0xff] }
 0x35c   : > { %v1387_v9 = vsub.f32 -inf, %v5163_v45 }
 0x35d   : > { %2603 = vst.msk [vmem:[#allocation4 + $0x58] sm:$0xff] %vm430_vm0, %v2571_v0 }
 0x379   : > { %v1889_v7 = vpop.xlane.xlu0 %1888 }
 0x37a   : > { %v1892_v60 = vpop.xlane.xlu1 %1891  ;;  %v1983_v54 = vadd.f32 %v1889_v7, %v1855_v43 }
 0x37b   : > { %v1984_v55 = vadd.f32 %v1892_v60, %v1856_v2  ;;  %v2064_v2 = vld [vmem:[#allocation4 + $0x88] sm:$0xff]  ;;  %v2255_v60 = vmul.f32 %v4778_v37, %v2063_v23 }
 0x37c   : > { %2725 = vperm.xlu0 %3595, %v1983_v54  }
 0x37d   : > { %2730 = vperm.xlu1 %3596, %v1984_v55   ;;  %v1898_v50 = vpop.xlane.xlu0 %1897 }
 0x37e   : > { %v1895_v17 = vpop.xlane.xlu1 %1894  ;;  %v1986_v39 = vadd.f32 %v1898_v50, %v1858_v16  ;;  %v1431_v50 = vmul.f32 1.442695, %v1387_v9 }
 0x37f   : > { %v1985_v18 = vadd.f32 %v1895_v17, %v1857_v62  ;;  %v1871_v62 = vmul.f32 0.0, %v4599_v56  ;;  %v5164_v17 = vld [vmem:[#allocation28_spill] sm:$0xff] }
 0x380   : > { %3823 = vpow2.f32 %v1431_v50 }
 0x381   : > { %2735 = vperm.xlu0 %3595, %v1985_v18   ;;  %2740 = vperm.xlu1 %3596, %v1986_v39   ;;  %v1904_v28 = vpop.xlane.xlu0 %1903  ;;  %v1388_v39 = vsub.f32 -inf, %v5164_v17 }
 0x382   : > { %v1901_v13 = vpop.xlane.xlu1 %1900  ;;  %v1988_v58 = vadd.f32 %v1904_v28, %v1860_v44 }
 0x383   : > { %v1987_v41 = vadd.f32 %v1901_v13, %v1859_v21  ;;  %v2256_v21 = vmul.f32 %v4781_v20, %v2064_v2  ;;  %v1433_v56 = vmul.f32 1.442695, %v1388_v39 }
 0x385   : > { %2745 = vperm.xlu0 %3595, %v1987_v41   ;;  %2750 = vperm.xlu1 %3596, %v1988_v58   ;;  %v1910_v27 = vpop.xlane.xlu0 %1909  ;;  %v1865_v41 = vmul.f32 0.0, %v4625_v22  ;;  %3825 = vpow2.f32 %v1433_v56 }
 0x386   : > { %v1907_v5 = vpop.xlane.xlu1 %1906  ;;  %v3440_v30 = vpop.f32.mrb[24].mxu1  ;;  %v1990_v14 = vadd.f32 %v1910_v27, %v1862_v57  ;;  %v5165_v57 = vld [vmem:[#allocation38_spill] sm:$0xff]  ;;  %v5166_v27 = vld [vmem:[#allocation35_spill] sm:$0xff] }
 0x387   : > { %v1989_v4 = vadd.f32 %v1907_v5, %v1861_v25  ;;  %v3441_v3 = vpop.f32.mrb[25].mxu1  ;;  %v1872_v25 = vmul.f32 0.0, %v5165_v57  ;;  %v1403_v5 = vsub.f32 -inf, %v5166_v27 }
 0x388   : > { %v4828_v42 = vadd.f32 %v3441_v3, %v3440_v30  ;;  %v3443_v52 = vpop.f32.mrb[26].mxu1  ;;  %v2065_v30 = vld [vmem:[#allocation4 + $0x90] sm:$0xff] }
 0x389   : > { %v3444_v61 = vpop.f32.mrb[27].mxu1  ;;  %2755 = vperm.xlu0 %3595, %v1989_v4   ;;  %2760 = vperm.xlu1 %3596, %v1990_v14   ;;  %v1916_v29 = vpop.xlane.xlu0 %1915  ;;  %v2066_v4 = vld [vmem:[#allocation4 + $0x98] sm:$0xff] }
 0x38a   : > { %v4832_v46 = vadd.f32 %v3444_v61, %v3443_v52  ;;  %v1913_v15 = vpop.xlane.xlu1 %1912  ;;  %v1992_v40 = vadd.f32 %v1916_v29, %v1864_v49  ;;  %v2257_v61 = vmul.f32 %v4790_v34, %v2065_v30  ;;  %v3824_v17 = vpop.eup %3823  ;;  %v5172_v30 = vld [vmem:[#allocation44_spill] sm:$0xff] }
 0x38b   : > { %v1991_v10 = vadd.f32 %v1913_v15, %v1863_v47  ;;  %v5167_v47 = vld [vmem:[#allocation40_spill] sm:$0xff]  ;;  %v5168_v15 = vld [vmem:[#allocation41_spill] sm:$0xff] }
 0x38c   : > { %v1866_v29 = vmul.f32 0.0, %v5167_v47 }
 0x38d   : > { %2765 = vperm.xlu0 %3595, %v1991_v10   ;;  %2770 = vperm.xlu1 %3596, %v1992_v40   ;;  %v1922_v12 = vpop.xlane.xlu0 %1921  ;;  %v1873_v40 = vmul.f32 0.0, %v5168_v15  ;;  %v5174_v15 = vld [vmem:[#allocation45_spill] sm:$0xff] }
 0x38e   : > { %v1919_v31 = vpop.xlane.xlu1 %1918  ;;  %v3446_v36 = vpop.f32.mrb[28].mxu1  ;;  %v1994_v9 = vadd.f32 %v1922_v12, %v1866_v29  ;;  %v2068_v12 = vld [vmem:[#allocation4 + $0xa8] sm:$0xff] }
 0x38f   : > { %v3447_v1 = vpop.f32.mrb[29].mxu1  ;;  %v1993_v3 = vadd.f32 %v1919_v31, %v1865_v41  ;;  %v1463_v31 = vmul.f32 1.442695, %v1403_v5  ;;  %v3826_v27 = vpop.eup %3825 }
 0x390   : > { %v4834_v63 = vadd.f32 %v3447_v1, %v3446_v36  ;;  %v3449_v11 = vpop.f32.mrb[30].mxu1  ;;  %v5169_v1 = vld [vmem:[#allocation34_spill] sm:$0xff] }
 0x391   : > { %v3450_v24 = vpop.f32.mrb[31].mxu1  ;;  %v4836_v38 = vpop.xlane.xlu0 %1927  ;;  %3827 = vpow2.f32 %v1463_v31 }
 0x392   : > { %v4838_v26 = vadd.f32 %v3450_v24, %v3449_v11  ;;  %v4840_v59 = vpop.xlane.xlu1 %1924  ;;  %v1404_v11 = vsub.f32 -inf, %v5169_v1  ;;  %v2258_v24 = vmul.f32 %v4788_v53, %v2066_v4  ;;  %v5173_v4 = vld [vmem:[#allocation32_spill] sm:$0xff] }
 0x395   : > { %v4843_v0 = vpop.xlane.xlu0 %1933 }
 0x396   : > { %v3452_v43 = vpop.f32.mrb[32].mxu1  ;;  %v4846_v54 = vpop.xlane.xlu1 %1930 }
 0x397   : > { %v3453_v7 = vpop.f32.mrb[33].mxu1 }
 0x398   : > { %v3454_v55 = vadd.f32 %v3453_v7, %v3452_v43  ;;  %v3455_v16 = vpop.f32.mrb[34].mxu1 }
 0x399   : > { %v3456_v18 = vpop.f32.mrb[35].mxu1  ;;  %v1937_v44 = vpop.xlane.xlu0 %1936 }
 0x39a   : > { %v2576_v28 = vadd.f32 %v3454_v55, %v2255_v60  ;;  %v3457_v13 = vadd.f32 %v3456_v18, %v3455_v16  ;;  %v1999_v58 = vadd.f32 %v1937_v44, %v1871_v62  ;;  %v1943_v49 = vpop.xlane.xlu1 %1942  ;;  %v5170_v60 = vld [vmem:[#allocation42_spill] sm:$0xff]  ;;  %v1465_v16 = vmul.f32 1.442695, %v1404_v11  ;;  %v2067_v62 = vld [vmem:[#allocation4 + $0xa0] sm:$0xff] }
 0x39b   : > { %v2001_v23 = vadd.f32 %v1943_v49, %v1873_v40  ;;  %v1874_v55 = vmul.f32 0.0, %v5170_v60  ;;  %v2259_v44 = vmul.f32 %v4794_v6, %v2067_v62  ;;  %v1877_v40 = vmul.f32 0.0, %v5174_v15  ;;  %v5175_v11 = vld [vmem:[#allocation30_spill] sm:$0xff]  ;;  %v5177_v62 = vld [vmem:[#allocation39_spill] sm:$0xff] }
 0x39c   : > { %2608 = vst.msk [vmem:[#allocation4 + $0x80] sm:$0xff] %vm430_vm0, %v2576_v28  ;;  %v2577_v37 = vadd.f32 %v3457_v13, %v2256_v21  ;;  %2805 = vperm.xlu0 %3595, %v1999_v58   ;;  %v5171_v21 = vld [vmem:[#allocation43_spill] sm:$0xff]  ;;  %3829 = vpow2.f32 %v1465_v16  ;;  %v1390_v31 = vsub.f32 -inf, %v5175_v11 }
 0x39d   : > { %v1940_v14 = vpop.xlane.xlu0 %1939  ;;  %v1875_v28 = vmul.f32 0.0, %v5171_v21 }
 0x39e   : > { %2609 = vst.msk [vmem:[#allocation4 + $0x88] sm:$0xff] %vm430_vm0, %v2577_v37  ;;  %v3458_v20 = vpop.f32.mrb[36].mxu1  ;;  %v2000_v52 = vadd.f32 %v1940_v14, %v1872_v25  ;;  %v1949_v39 = vpop.xlane.xlu1 %1948  ;;  %v2260_v37 = vmul.f32 %v4796_v51, %v2068_v12  ;;  %v1876_v14 = vmul.f32 0.0, %v5172_v30  ;;  %v1437_v16 = vmul.f32 1.442695, %v1390_v31 }
 0x39f   : > { %v3459_v22 = vpop.f32.mrb[37].mxu1  ;;  %v2003_v57 = vadd.f32 %v1949_v39, %v1875_v28  ;;  %v4871_v51 = vpop.eup %3827  ;;  %v1868_v28 = vmul.f32 0.0, %v3826_v27 }
 0x3a0   : > { %v3460_v10 = vadd.f32 %v3459_v22, %v3458_v20  ;;  %v3461_v36 = vpop.f32.mrb[38].mxu1  ;;  %2775 = vperm.xlu0 %3595, %v1993_v3   ;;  %2810 = vperm.xlu1 %3596, %v2000_v52   ;;  %v1389_v3 = vsub.f32 -inf, %v5173_v4  ;;  %v2069_v20 = vld [vmem:[#allocation4 + $0xb0] sm:$0xff]  ;;  %v2070_v22 = vld [vmem:[#allocation4 + $0xb8] sm:$0xff] }
 0x3a1   : > { %v3462_v45 = vpop.f32.mrb[39].mxu1  ;;  %v1946_v34 = vpop.xlane.xlu0 %1945  ;;  %v2261_v29 = vmul.f32 %v4800_v33, %v2069_v20  ;;  %v1867_v33 = vmul.f32 0.0, %v3824_v17  ;;  %v1996_v30 = vadd.f32 %v4836_v38, %v1868_v28  ;;  %v2074_v38 = vld [vmem:[#allocation4 + $0xd8] sm:$0xff] }
 0x3a2   : > { %v2578_v43 = vadd.f32 %v3460_v10, %v2257_v61  ;;  %v3463_v2 = vadd.f32 %v3462_v45, %v3461_v36  ;;  %v2002_v50 = vadd.f32 %v1946_v34, %v1874_v55  ;;  %v1955_v61 = vpop.xlane.xlu1 %1954  ;;  %v1435_v1 = vmul.f32 1.442695, %v1389_v3 }
 0x3a3   : > { %v2262_v45 = vmul.f32 %v4803_v19, %v2070_v22  ;;  %v2071_v19 = vld [vmem:[#allocation4 + $0xc0] sm:$0xff]  ;;  %v1995_v12 = vadd.f32 %v4840_v59, %v1867_v33  ;;  %v2266_v31 = vmul.f32 %v4818_v48, %v2074_v38  ;;  %v1883_v48 = vmul.f32 0.0, %v4871_v51 }
 0x3a4   : > { %2610 = vst.msk [vmem:[#allocation4 + $0x90] sm:$0xff] %vm430_vm0, %v2578_v43  ;;  %v2579_v7 = vadd.f32 %v3463_v2, %v2258_v24  ;;  %2815 = vperm.xlu0 %3595, %v2001_v23   ;;  %2780 = vperm.xlu1 %3596, %v1994_v9   ;;  %v2005_v9 = vadd.f32 %v1955_v61, %v1877_v40  ;;  %3831 = vpow2.f32 %v1435_v1  ;;  %v5181_v40 = vld [vmem:[#allocation16_spill] sm:$0xff] }
 0x3a5   : > { %v1952_v5 = vpop.xlane.xlu0 %1951  ;;  %v2263_v21 = vmul.f32 %v4808_v8, %v2071_v19  ;;  %3833 = vpow2.f32 %v1437_v16 }
 0x3a6   : > { %2611 = vst.msk [vmem:[#allocation4 + $0x98] sm:$0xff] %vm430_vm0, %v2579_v7  ;;  %v3464_v53 = vpop.f32.mrb[40].mxu1  ;;  %v2004_v52 = vadd.f32 %v1952_v5, %v1876_v14  ;;  %v4878_v2 = vpop.eup %3829  ;;  %v5176_v7 = vld [vmem:[#allocation46_spill] sm:$0xff] }
 0x3a7   : > { %v3465_v18 = vpop.f32.mrb[41].mxu1  ;;  %v1878_v60 = vmul.f32 0.0, %v5176_v7 }
 0x3a8   : > { %v3466_v13 = vadd.f32 %v3465_v18, %v3464_v53  ;;  %v3467_v58 = vpop.f32.mrb[42].mxu1  ;;  %2141 = vperm.xlu0 %3595, %v3824_v17   ;;  %2820 = vperm.xlu1 %3596, %v2002_v50   ;;  %v1405_v50 = vsub.f32 -inf, %v5177_v62  ;;  %v2072_v53 = vld [vmem:[#allocation4 + $0xc8] sm:$0xff]  ;;  %v1961_v18 = vpop.xlane.xlu1 %1960 }
 0x3a9   : > { %v3468_v41 = vpop.f32.mrb[43].mxu1  ;;  %v1958_v34 = vpop.xlane.xlu0 %1957  ;;  %v2264_v59 = vmul.f32 %v4810_v35, %v2072_v53 }
 0x3aa   : > { %v2580_v25 = vadd.f32 %v3466_v13, %v2259_v44  ;;  %v3469_v56 = vadd.f32 %v3468_v41, %v3467_v58  ;;  %v2006_v39 = vadd.f32 %v1958_v34, %v1878_v60  ;;  %v5178_v13 = vld [vmem:[#allocation47_spill] sm:$0xff]  ;;  %v5182_v34 = vld [vmem:[#allocation49_spill] sm:$0xff] }
 0x3ab   : > { %v1879_v58 = vmul.f32 0.0, %v5178_v13  ;;  %v1882_v33 = vmul.f32 0.0, %v5182_v34 }
 0x3ac   : > { %2612 = vst.msk [vmem:[#allocation4 + $0xa0] sm:$0xff] %vm430_vm0, %v2580_v25  ;;  %v2581_v6 = vadd.f32 %v3469_v56, %v2260_v37  ;;  %2825 = vperm.xlu0 %3595, %v2003_v57   ;;  %2146 = vperm.xlu1 %3596, %v3826_v27   ;;  %v5179_v57 = vld [vmem:[#allocation37_spill] sm:$0xff]  ;;  %v1467_v56 = vmul.f32 1.442695, %v1405_v50  ;;  %v5180_v27 = vld [vmem:[#allocation48_spill] sm:$0xff] }
 0x3ad   : > { %v1406_v25 = vsub.f32 -inf, %v5179_v57  ;;  %v2007_v14 = vadd.f32 %v1961_v18, %v1879_v58  ;;  %v1964_v8 = vpop.xlane.xlu0 %1963  ;;  %v1880_v3 = vmul.f32 0.0, %v5180_v27 }
 0x3ae   : > { %2613 = vst.msk [vmem:[#allocation4 + $0xa8] sm:$0xff] %vm430_vm0, %v2581_v6  ;;  %v3470_v49 = vpop.f32.mrb[44].mxu1  ;;  %3835 = vpow2.f32 %v1467_v56  ;;  %v3832_v61 = vpop.eup %3831 }
 0x3af   : > { %v3471_v47 = vpop.f32.mrb[45].mxu1  ;;  %v2008_v22 = vadd.f32 %v1964_v8, %v1880_v3 }
 0x3b0   : > { %v3472_v10 = vadd.f32 %v3471_v47, %v3470_v49  ;;  %v3473_v36 = vpop.f32.mrb[46].mxu1  ;;  %2221 = vperm.xlu0 %3595, %v4871_v51   ;;  %2830 = vperm.xlu1 %3596, %v2004_v52   ;;  %v1469_v52 = vmul.f32 1.442695, %v1406_v25  ;;  %v2073_v49 = vld [vmem:[#allocation4 + $0xd0] sm:$0xff]  ;;  %v1967_v47 = vpop.xlane.xlu1 %1966 }
 0x3b1   : > { %v3474_v24 = vpop.f32.mrb[47].mxu1  ;;  %v2265_v15 = vmul.f32 %v4816_v32, %v2073_v49 }
 0x3b2   : > { %v2582_v23 = vadd.f32 %v3472_v10, %v2261_v29  ;;  %v3475_v43 = vadd.f32 %v3474_v24, %v3473_v36  ;;  %v1881_v10 = vmul.f32 0.0, %v5181_v40  ;;  %3837 = vpow2.f32 %v1469_v52 }
 0x3b4   : > { %2614 = vst.msk [vmem:[#allocation4 + $0xb0] sm:$0xff] %vm430_vm0, %v2582_v23  ;;  %v2583_v55 = vadd.f32 %v3475_v43, %v2262_v45  ;;  %2835 = vperm.xlu0 %3595, %v2005_v9   ;;  %2226 = vperm.xlu1 %3596, %v4878_v2   ;;  %v2009_v24 = vadd.f32 %v1967_v47, %v1881_v10  ;;  %v3834_v23 = vpop.eup %3833  ;;  %v1970_v43 = vpop.xlane.xlu0 %1969 }
 0x3b5   : > { %v2010_v7 = vadd.f32 %v1970_v43, %v1882_v33  ;;  %v1973_v16 = vpop.xlane.xlu1 %1972  ;;  %v1870_v58 = vmul.f32 0.0, %v3834_v23 }
 0x3b6   : > { %2615 = vst.msk [vmem:[#allocation4 + $0xb8] sm:$0xff] %vm430_vm0, %v2583_v55  ;;  %v3476_v17 = vpop.f32.mrb[48].mxu1 }
 0x3b7   : > { %v3477_v44 = vpop.f32.mrb[49].mxu1 }
 0x3b8   : > { %v3478_v41 = vadd.f32 %v3477_v44, %v3476_v17  ;;  %v3479_v37 = vpop.f32.mrb[50].mxu1  ;;  %2785 = vperm.xlu0 %3595, %v1995_v12   ;;  %2840 = vperm.xlu1 %3596, %v2006_v39   ;;  %v3836_v55 = vpop.eup %3835  ;;  %v2011_v12 = vadd.f32 %v1973_v16, %v1883_v48  ;;  %v1869_v44 = vmul.f32 0.0, %v3832_v61  ;;  %v2707_v48 = vld [vmem:[#allocation4 + $0x80] sm:$0xff] }
 0x3b9   : > { %v3480_v5 = vpop.f32.mrb[51].mxu1  ;;  %v1976_v18 = vpop.xlane.xlu0 %1975 }
 0x3ba   : > { %v2584_v6 = vadd.f32 %v3478_v41, %v2263_v21  ;;  %v3481_v4 = vadd.f32 %v3480_v5, %v3479_v37  ;;  %v1884_v21 = vmul.f32 0.0, %v4878_v2  ;;  %v1997_v28 = vadd.f32 %v4846_v54, %v1869_v44  ;;  %v2967_v2 = vld [vmem:[%s5051_s4] sm:$0xff]  ;;  %v2969_v54 = vld [vmem:[%s5051_s4 + $0x10] sm:$0xff]  ;;  %v2970_v5 = vld [vmem:[%s5051_s4 + $0x18] sm:$0xff] }
 0x3bb   : > { %v1885_v41 = vmul.f32 0.0, %v3836_v55  ;;  %v1998_v37 = vadd.f32 %v4843_v0, %v1870_v58  ;;  %v2968_v0 = vld [vmem:[%s5051_s4 + $0x8] sm:$0xff]  ;;  %v2075_v58 = vld [vmem:[#allocation4 + $0xe0] sm:$0xff] }
 0x3bc   : > { %2616 = vst.msk [vmem:[#allocation4 + $0xc0] sm:$0xff] %vm430_vm0, %v2584_v6  ;;  %v2585_v20 = vadd.f32 %v3481_v4, %v2264_v59  ;;  %2845 = vperm.xlu0 %3595, %v2007_v14   ;;  %2790 = vperm.xlu1 %3596, %v1996_v30   ;;  %v3838_v17 = vpop.eup %3837  ;;  %v2012_v13 = vadd.f32 %v1976_v18, %v1884_v21  ;;  %v4923_v30 = vld [vmem:[%s5050_s3] sm:$0xff]  }
 0x3bd   : > { %v1982_v25 = vpop.xlane.xlu0 %1981  ;;  %v1886_v56 = vmul.f32 0.0, %v3838_v17  ;;  %3516 = vmatprep.mubr.msk.bf16.mxu1 %vm430_vm0, %v4923_v30 }
 0x3be   : > { %2617 = vst.msk [vmem:[#allocation4 + $0xc8] sm:$0xff] %vm430_vm0, %v2585_v20  ;;  %v3482_v35 = vpop.f32.mrb[52].mxu1 }
 0x3bf   : > { %v3483_v29 = vpop.f32.mrb[53].mxu1  ;;  %v2014_v59 = vadd.f32 %v1982_v25, %v1886_v56 }
 0x3c0   : > { %v3484_v36 = vadd.f32 %v3483_v29, %v3482_v35  ;;  %v3485_v1 = vpop.f32.mrb[54].mxu1  ;;  %2151 = vperm.xlu0 %3595, %v3832_v61   ;;  %2850 = vperm.xlu1 %3596, %v2008_v22   ;;  %v1979_v51 = vpop.xlane.xlu1 %1978 }
 0x3c1   : > { %v3486_v11 = vpop.f32.mrb[55].mxu1  ;;  %v2013_v57 = vadd.f32 %v1979_v51, %v1885_v41 }
 0x3c2   : > { %v2586_v45 = vadd.f32 %v3484_v36, %v2265_v15  ;;  %v3487_v9 = vadd.f32 %v3486_v11, %v3485_v1 }
 0x3c4   : > { %2618 = vst.msk [vmem:[#allocation4 + $0xd0] sm:$0xff] %vm430_vm0, %v2586_v45  ;;  %v2587_v32 = vadd.f32 %v3487_v9, %v2266_v31  ;;  %2855 = vperm.xlu0 %3595, %v2009_v24   ;;  %2156 = vperm.xlu1 %3596, %v3834_v23   ;;  %v2059_v45 = vld [vmem:[#allocation4 + $0x60] sm:$0xff]  ;;  %v2692_v23 = vld [vmem:[#allocation4 + $0x8] sm:$0xff] }
 0x3c5   : > { %v2691_v9 = vld [vmem:[#allocation4] sm:$0xff] }
 0x3c6   : > { %2619 = vst.msk [vmem:[#allocation4 + $0xd8] sm:$0xff] %vm430_vm0, %v2587_v32  ;;  %v3488_v60 = vpop.f32.mrb[56].mxu1 }
 0x3c7   : > { %v3489_v62 = vpop.f32.mrb[57].mxu1 }
 0x3c8   : > { %v4901_v50 = vadd.f32 %v3489_v62, %v3488_v60  ;;  %v3491_v19 = vpop.f32.mrb[58].mxu1  ;;  %2231 = vperm.xlu0 %3595, %v3836_v55   ;;  %2860 = vperm.xlu1 %3596, %v2010_v7   ;;  %v2060_v55 = vld [vmem:[#allocation4 + $0x68] sm:$0xff] }
 0x3c9   : > { %v3492_v53 = vpop.f32.mrb[59].mxu1 }
 0x3ca   : > { %v4903_v39 = vadd.f32 %v3492_v53, %v3491_v19  ;;  %v2708_v19 = vld [vmem:[#allocation4 + $0x88] sm:$0xff] }
 0x3cc   : > { %2865 = vperm.xlu0 %3595, %v2011_v12   ;;  %2236 = vperm.xlu1 %3596, %v3838_v17  }
 0x3d0   : > { %2795 = vperm.xlu0 %3595, %v1997_v28   ;;  %2870 = vperm.xlu1 %3596, %v2012_v13  }
 0x3d4   : > { %2875 = vperm.xlu0 %3595, %v2013_v57   ;;  %2800 = vperm.xlu1 %3596, %v1998_v37   ;;  %v2693_v37 = vld [vmem:[#allocation4 + $0x10] sm:$0xff]  ;;  %v2694_v57 = vld [vmem:[#allocation4 + $0x18] sm:$0xff] }
 0x3d8   : > { %2973 = vperm.xlu0 %3595, %v2967_v2   ;;  %2880 = vperm.xlu1 %3596, %v2014_v59  }
 0x3dc   : > { %2983 = vperm.xlu0 %3595, %v2969_v54   ;;  %2978 = vperm.xlu1 %3596, %v2968_v0  }
 0x3e0   : > { %2988 = vperm.xlu1 %3596, %v2970_v5   ;;  %v2076_v5 = vld [vmem:[#allocation4 + $0xe8] sm:$0xff] }
 0x3fb   : > { %v2726_v14 = vpop.permute.xlu0 %2725 }
 0x3fc   : > { %v2731_v6 = vpop.permute.xlu1 %2730  ;;  %3839 = vrcp.f32 %v2726_v14 }
 0x3fd   : > { %3841 = vrcp.f32 %v2731_v6  ;;  %v2709_v6 = vld [vmem:[#allocation4 + $0x90] sm:$0xff] }
 0x400   : > { %v2736_v4 = vpop.permute.xlu0 %2735  ;;  %v2741_v3 = vpop.permute.xlu1 %2740 }
 0x404   : > { %v2746_v22 = vpop.permute.xlu0 %2745  ;;  %v2751_v61 = vpop.permute.xlu1 %2750 }
 0x406   : > { %v3840_v1 = vpop.eup %3839 }
 0x407   : > { %v3494_v8 = vpop.f32.mrb[60].mxu1  ;;  %v3842_v24 = vpop.eup %3841  ;;  %v2884_v33 = vmul.f32 %v3840_v1, %v2691_v9  ;;  %v2695_v1 = vld [vmem:[#allocation4 + $0x20] sm:$0xff] }
 0x408   : > { %v3495_v27 = vpop.f32.mrb[61].mxu1  ;;  %v4931_v38 = vpop.permute.xlu0 %2755  ;;  %v2886_v32 = vmul.f32 %v3842_v24, %v2692_v23 }
 0x409   : > { %v4927_v20 = vadd.f32 %v3495_v27, %v3494_v8  ;;  %v3497_v52 = vpop.f32.mrb[62].mxu1  ;;  %v2761_v47 = vpop.permute.xlu1 %2760 }
 0x40a   : > { %v3498_v49 = vpop.f32.mrb[63].mxu1  ;;  %v2947_v21 = vpack.c.bf16 %v2886_v32, %v2884_v33 }
 0x40b   : > { %v4929_v35 = vadd.f32 %v3498_v49, %v3497_v52 }
 0x40c   : > { %v4933_v29 = vpop.permute.xlu0 %2765  ;;  %v3009_v56 = vsel %vm430_vm0, %v2947_v21, 0 }
 0x40d   : > { %v4935_v15 = vpop.permute.xlu1 %2770 }
 0x41b   : > { %v2806_v40 = vpop.permute.xlu0 %2805 }
 0x41c   : > { %3843 = vrcp.f32 %v2806_v40 }
 0x41f   : > { %v2811_v10 = vpop.permute.xlu1 %2810  ;;  %v4937_v36 = vpop.permute.xlu0 %2775 }
 0x420   : > { %3845 = vrcp.f32 %v2811_v10 }
 0x421   : > { %3847 = vrcp.f32 %v2741_v3 }
 0x422   : > { %3849 = vrcp.f32 %v2736_v4  ;;  %v2710_v4 = vld [vmem:[#allocation4 + $0x98] sm:$0xff] }
 0x423   : > { %v4939_v11 = vpop.permute.xlu1 %2780  ;;  %v2816_v31 = vpop.permute.xlu0 %2815 }
 0x424   : > { %3851 = vrcp.f32 %v2816_v31 }
 0x426   : > { %v3844_v7 = vpop.eup %3843 }
 0x427   : > { %v2821_v43 = vpop.permute.xlu1 %2820  ;;  %v2142_v34 = vpop.permute.xlu0 %2141  ;;  %v2916_v18 = vmul.f32 %v3844_v7, %v2707_v48 }
 0x428   : > { %3853 = vrcp.f32 %v2821_v43  ;;  %v2251_v60 = vmul.f32 %v2142_v34, %v2059_v45  ;;  %v2711_v43 = vld [vmem:[#allocation4 + $0xa0] sm:$0xff]  ;;  %v2712_v34 = vld [vmem:[#allocation4 + $0xa8] sm:$0xff] }
 0x429   : > { %3855 = vrcp.f32 %v2751_v61 }
 0x42a   : > { %v3846_v16 = vpop.eup %3845  ;;  %3857 = vrcp.f32 %v2746_v22  ;;  %v2572_v62 = vadd.f32 %v4828_v42, %v2251_v60 }
 0x42b   : > { %v3848_v53 = vpop.eup %3847  ;;  %v2147_v12 = vpop.permute.xlu1 %2146  ;;  %v2918_v44 = vmul.f32 %v3846_v16, %v2708_v19  ;;  %v2061_v19 = vld [vmem:[#allocation4 + $0x70] sm:$0xff] }
 0x42c   : > { %v2826_v17 = vpop.permute.xlu0 %2825  ;;  %v3850_v28 = vpop.eup %3849  ;;  %2604 = vst.msk [vmem:[#allocation4 + $0x60] sm:$0xff] %vm430_vm0, %v2572_v62  ;;  %v2252_v13 = vmul.f32 %v2147_v12, %v2060_v55  ;;  %v2890_v59 = vmul.f32 %v3848_v53, %v2694_v57  ;;  %v2697_v53 = vld [vmem:[#allocation4 + $0x30] sm:$0xff]  ;;  %v2698_v12 = vld [vmem:[#allocation4 + $0x38] sm:$0xff] }
 0x42d   : > { %v2955_v51 = vpack.c.bf16 %v2918_v44, %v2916_v18  ;;  %3859 = vrcp.f32 %v2826_v17  ;;  %v2888_v2 = vmul.f32 %v3850_v28, %v2693_v37  ;;  %v2714_v37 = vld [vmem:[#allocation4 + $0xb8] sm:$0xff] }
 0x42e   : > { %v2573_v41 = vadd.f32 %v4832_v46, %v2252_v13  ;;  %v3852_v54 = vpop.eup %3851  ;;  %v2062_v13 = vld [vmem:[#allocation4 + $0x78] sm:$0xff] }
 0x42f   : > { %v2831_v42 = vpop.permute.xlu1 %2830  ;;  %3528 = vmatprep.subr.msk.bf16.mxu1 %vm430_vm0, %v2955_v51  ;;  %v2920_v52 = vmul.f32 %v3852_v54, %v2709_v6  ;;  %v2948_v22 = vpack.c.bf16 %v2890_v59, %v2888_v2 }
 0x430   : > { %v2222_v25 = vpop.permute.xlu0 %2221  ;;  %2605 = vst.msk [vmem:[#allocation4 + $0x68] sm:$0xff] %vm430_vm0, %v2573_v41  ;;  %3861 = vrcp.f32 %v2831_v42  ;;  %3501 = vmatpush3.bf16.xpose.msra.mxu1 %v3009_v56  ;;  %v2713_v41 = vld [vmem:[#allocation4 + $0xb0] sm:$0xff] }
 0x431   : > { %v2267_v0 = vmul.f32 %v2222_v25, %v2075_v58  ;;  %3863 = vrcp.f32 %v2761_v47  ;;  %v3012_v24 = vsel %vm430_vm0, %v2948_v22, 0 }
 0x432   : > { %v3854_v46 = vpop.eup %3853  ;;  %3865 = vrcp.f32 %v4931_v38  ;;  %v2696_v38 = vld [vmem:[#allocation4 + $0x28] sm:$0xff] }
 0x433   : > { %v2588_v14 = vadd.f32 %v4901_v50, %v2267_v0  ;;  %v3856_v8 = vpop.eup %3855  ;;  %v2227_v27 = vpop.permute.xlu1 %2226  ;;  %v2922_v49 = vmul.f32 %v3854_v46, %v2710_v4  ;;  %v2077_v46 = vld [vmem:[#allocation4 + $0xf0] sm:$0xff] }
 0x434   : > { %v2836_v3 = vpop.permute.xlu0 %2835  ;;  %v3858_v61 = vpop.eup %3857  ;;  %v2268_v40 = vmul.f32 %v2227_v27, %v2076_v5  ;;  %v2894_v9 = vmul.f32 %v3856_v8, %v2696_v38 }
 0x435   : > { %2620 = vst.msk [vmem:[#allocation4 + $0xe0] sm:$0xff] %vm430_vm0, %v2588_v14  ;;  %v2956_v10 = vpack.c.bf16 %v2922_v49, %v2920_v52  ;;  %3867 = vrcp.f32 %v2836_v3  ;;  %v2892_v45 = vmul.f32 %v3858_v61, %v2695_v1  ;;  %v2700_v14 = vld [vmem:[#allocation4 + $0x48] sm:$0xff]  ;;  %v2078_v49 = vld [vmem:[#allocation4 + $0xf8] sm:$0xff]  ;;  %v2715_v61 = vld [vmem:[#allocation4 + $0xc0] sm:$0xff] }
 0x436   : > { %v2589_v47 = vadd.f32 %v4903_v39, %v2268_v40  ;;  %v2716_v40 = vld [vmem:[#allocation4 + $0xc8] sm:$0xff] }
 0x437   : > { %v2841_v31 = vpop.permute.xlu1 %2840  ;;  %3529 = vmatprep.subr.msk.bf16.mxu1 %vm430_vm0, %v2956_v10  ;;  %v3860_v23 = vpop.eup %3859  ;;  %v2949_v16 = vpack.c.bf16 %v2894_v9, %v2892_v45 }
 0x438   : > { %v4952_v50 = vpop.permute.xlu0 %2785  ;;  %2621 = vst.msk [vmem:[#allocation4 + $0xe8] sm:$0xff] %vm430_vm0, %v2589_v47  ;;  %3869 = vrcp.f32 %v2841_v31  ;;  %3503 = vmatpush3.bf16.xpose.msra.mxu1 %v3012_v24  ;;  %v2924_v60 = vmul.f32 %v3860_v23, %v2711_v43  ;;  %v2702_v43 = vld [vmem:[#allocation4 + $0x58] sm:$0xff] }
 0x439   : > { %3871 = vrcp.f32 %v4935_v15 }
 0x43a   : > { %v3862_v39 = vpop.eup %3861  ;;  %3873 = vrcp.f32 %v4933_v29  ;;  %v3015_v29 = vsel %vm430_vm0, %v2949_v16, 0  ;;  %v2717_v16 = vld [vmem:[#allocation4 + $0xd0] sm:$0xff] }
 0x43b   : > { %v3864_v33 = vpop.eup %3863  ;;  %v2791_v32 = vpop.permute.xlu1 %2790  ;;  %v2926_v55 = vmul.f32 %v3862_v39, %v2712_v34 }
 0x43c   : > { %v2846_v7 = vpop.permute.xlu0 %2845  ;;  %v3866_v62 = vpop.eup %3865  ;;  %v2898_v44 = vmul.f32 %v3864_v33, %v2698_v12 }
 0x43d   : > { %v2957_v48 = vpack.c.bf16 %v2926_v55, %v2924_v60  ;;  %3875 = vrcp.f32 %v2846_v7  ;;  %v2896_v18 = vmul.f32 %v3866_v62, %v2697_v53  ;;  %v2718_v62 = vld [vmem:[#allocation4 + $0xd8] sm:$0xff] }
 0x43f   : > { %v2851_v17 = vpop.permute.xlu1 %2850  ;;  %3530 = vmatprep.subr.msk.bf16.mxu1 %vm430_vm0, %v2957_v48  ;;  %v3868_v21 = vpop.eup %3867  ;;  %v2950_v59 = vpack.c.bf16 %v2898_v44, %v2896_v18  ;;  %v2704_v18 = vld [vmem:[#allocation4 + $0x68] sm:$0xff] }
 0x440   : > { %v2152_v15 = vpop.permute.xlu0 %2151  ;;  %3877 = vrcp.f32 %v2851_v17  ;;  %3505 = vmatpush3.bf16.xpose.msra.mxu1 %v3015_v29  ;;  %v2928_v56 = vmul.f32 %v3868_v21, %v2713_v41 }
 0x441   : > { %v2253_v28 = vmul.f32 %v2152_v15, %v2061_v19  ;;  %3879 = vrcp.f32 %v4939_v11  ;;  %v3018_v8 = vsel %vm430_vm0, %v2950_v59, 0 }
 0x442   : > { %v3870_v51 = vpop.eup %3869  ;;  %3881 = vrcp.f32 %v4937_v36 }
 0x443   : > { %v2574_v58 = vadd.f32 %v4834_v63, %v2253_v28  ;;  %v3872_v57 = vpop.eup %3871  ;;  %v2157_v42 = vpop.permute.xlu1 %2156  ;;  %v2930_v2 = vmul.f32 %v3870_v51, %v2714_v37  ;;  %v2699_v63 = vld [vmem:[#allocation4 + $0x40] sm:$0xff] }
 0x444   : > { %v2856_v25 = vpop.permute.xlu0 %2855  ;;  %v3874_v54 = vpop.eup %3873  ;;  %v2254_v0 = vmul.f32 %v2157_v42, %v2062_v13  ;;  %v2902_v3 = vmul.f32 %v3872_v57, %v2700_v14  ;;  %v2703_v51 = vld [vmem:[#allocation4 + $0x60] sm:$0xff]  ;;  %v2720_v57 = vld [vmem:[#allocation4 + $0xe8] sm:$0xff] }
 0x445   : > { %2606 = vst.msk [vmem:[#allocation4 + $0x70] sm:$0xff] %vm430_vm0, %v2574_v58  ;;  %v2958_v5 = vpack.c.bf16 %v2930_v2, %v2928_v56  ;;  %3883 = vrcp.f32 %v2856_v25  ;;  %v2900_v27 = vmul.f32 %v3874_v54, %v2699_v63  ;;  %v2719_v37 = vld [vmem:[#allocation4 + $0xe0] sm:$0xff] }
 0x446   : > { %v2575_v11 = vadd.f32 %v4838_v26, %v2254_v0 }
 0x447   : > { %v2861_v6 = vpop.permute.xlu1 %2860  ;;  %3531 = vmatprep.subr.msk.bf16.mxu1 %vm430_vm0, %v2958_v5  ;;  %v3876_v52 = vpop.eup %3875  ;;  %v2951_v31 = vpack.c.bf16 %v2902_v3, %v2900_v27 }
 0x448   : > { %v2232_v4 = vpop.permute.xlu0 %2231  ;;  %2607 = vst.msk [vmem:[#allocation4 + $0x78] sm:$0xff] %vm430_vm0, %v2575_v11  ;;  %3885 = vrcp.f32 %v2861_v6  ;;  %3507 = vmatpush3.bf16.xpose.msra.mxu1 %v3018_v8  ;;  %v2932_v1 = vmul.f32 %v3876_v52, %v2715_v61 }
 0x449   : > { %v2269_v36 = vmul.f32 %v2232_v4, %v2077_v46  ;;  %3887 = vrcp.f32 %v2791_v32  ;;  %v3021_v33 = vsel %vm430_vm0, %v2951_v31, 0 }
 0x44a   : > { %v3878_v22 = vpop.eup %3877  ;;  %3889 = vrcp.f32 %v4952_v50  ;;  %v2701_v50 = vld [vmem:[#allocation4 + $0x50] sm:$0xff] }
 0x44b   : > { %v2590_v26 = vadd.f32 %v4927_v20, %v2269_v36  ;;  %v2237_v10 = vpop.permute.xlu1 %2236  ;;  %v2934_v38 = vmul.f32 %v3878_v22, %v2716_v40  ;;  %v3880_v24 = vpop.eup %3879  ;;  %v3646_v22 = vld [vmem:[%s5050_s3 + $0x8] sm:$0xff]  }
 0x44c   : > { %v2866_v47 = vpop.permute.xlu0 %2865  ;;  %v2270_v45 = vmul.f32 %v2237_v10, %v2078_v49  ;;  %v3882_v23 = vpop.eup %3881  ;;  %v2906_v32 = vmul.f32 %v3880_v24, %v2702_v43  ;;  %v2705_v63 = vld [vmem:[#allocation4 + $0x70] sm:$0xff] }
 0x44d   : > { %2622 = vst.msk [vmem:[#allocation4 + $0xf0] sm:$0xff] %vm430_vm0, %v2590_v26  ;;  %v2959_v9 = vpack.c.bf16 %v2934_v38, %v2932_v1  ;;  %3891 = vrcp.f32 %v2866_v47  ;;  %v2904_v60 = vmul.f32 %v3882_v23, %v2701_v50 }
 0x44e   : > { %v2591_v39 = vadd.f32 %v4929_v35, %v2270_v45 }
 0x44f   : > { %v2871_v20 = vpop.permute.xlu1 %2870  ;;  %3532 = vmatprep.subr.msk.bf16.mxu1 %vm430_vm0, %v2959_v9  ;;  %v3884_v7 = vpop.eup %3883  ;;  %v2952_v12 = vpack.c.bf16 %v2906_v32, %v2904_v60  ;;  %v2706_v0 = vld [vmem:[#allocation4 + $0x78] sm:$0xff] }
 0x450   : > { %v2796_v34 = vpop.permute.xlu0 %2795  ;;  %2623 = vst.msk [vmem:[#allocation4 + $0xf8] sm:$0xff] %vm430_vm0, %v2591_v39  ;;  %3893 = vrcp.f32 %v2871_v20  ;;  %3509 = vmatpush3.bf16.xpose.msra.mxu1 %v3021_v33  ;;  %v2936_v19 = vmul.f32 %v3884_v7, %v2717_v16 }
 0x451   : > { %3895 = vrcp.f32 %v2796_v34  ;;  %v3024_v21 = vsel %vm430_vm0, %v2952_v12, 0 }
 0x452   : > { %v3886_v55 = vpop.eup %3885 }
 0x453   : > { %v2801_v35 = vpop.permute.xlu1 %2800  ;;  %v2938_v53 = vmul.f32 %v3886_v55, %v2718_v62  ;;  %v3888_v17 = vpop.eup %3887 }
 0x454   : > { %v2876_v48 = vpop.permute.xlu0 %2875  ;;  %3897 = vrcp.f32 %v2801_v35  ;;  %v3890_v29 = vpop.eup %3889  ;;  %v2910_v28 = vmul.f32 %v3888_v17, %v2704_v18  ;;  %v2721_v4 = vld [vmem:[#allocation4 + $0xf0] sm:$0xff] }
 0x455   : > { %v2960_v15 = vpack.c.bf16 %v2938_v53, %v2936_v19  ;;  %3899 = vrcp.f32 %v2876_v48  ;;  %v2908_v58 = vmul.f32 %v3890_v29, %v2703_v51 }
 0x457   : > { %v2881_v44 = vpop.permute.xlu1 %2880  ;;  %3533 = vmatprep.subr.msk.bf16.mxu1 %vm430_vm0, %v2960_v15  ;;  %v3892_v13 = vpop.eup %3891  ;;  %v2953_v56 = vpack.c.bf16 %v2910_v28, %v2908_v58  ;;  %v2722_v8 = vld [vmem:[#allocation4 + $0xf8] sm:$0xff] }
 0x458   : > { %3901 = vrcp.f32 %v2881_v44  ;;  %3511 = vmatpush3.bf16.xpose.msra.mxu1 %v3024_v21  ;;  %v2940_v42 = vmul.f32 %v3892_v13, %v2719_v37  ;;  %v2974_v26 = vpop.permute.xlu0 %2973 }
 0x459   : > { %v3027_v5 = vsel %vm430_vm0, %v2953_v56, 0 }
 0x45a   : > { %v3894_v41 = vpop.eup %3893 }
 0x45b   : > { %v2942_v25 = vmul.f32 %v3894_v41, %v2720_v57  ;;  %v3896_v2 = vpop.eup %3895  ;;  %v2979_v47 = vpop.permute.xlu1 %2978 }
 0x45c   : > { %v2912_v14 = vmul.f32 %v3896_v2, %v2705_v63  ;;  %v2984_v45 = vpop.permute.xlu0 %2983 }
 0x45d   : > { %v2961_v59 = vpack.c.bf16 %v2942_v25, %v2940_v42 }
 0x45e   : > { %v3898_v54 = vpop.eup %3897 }
 0x45f   : > { %3534 = vmatprep.subr.msk.bf16.mxu1 %vm430_vm0, %v2961_v59  ;;  %v2914_v46 = vmul.f32 %v3898_v54, %v2706_v0  ;;  %v3900_v11 = vpop.eup %3899  ;;  %v2989_v43 = vpop.permute.xlu1 %2988 }
 0x460   : > { %3513 = vmatpush3.bf16.xpose.msra.mxu1 %v3027_v5  ;;  %v2944_v27 = vmul.f32 %v3900_v11, %v2721_v4 }
 0x461   : > { %v2954_v52 = vpack.c.bf16 %v2914_v46, %v2912_v14 }
 0x462   : > { %v3902_v6 = vpop.eup %3901 }
 0x463   : > { %v2946_v3 = vmul.f32 %v3902_v6, %v2722_v8  ;;  %v3030_v49 = vsel %vm430_vm0, %v2954_v52, 0 }
 0x465   : > { %v2962_v36 = vpack.c.bf16 %v2946_v3, %v2944_v27 }
 0x467   : > { %3535 = vmatprep.subr.msk.bf16.mxu1 %vm430_vm0, %v2962_v36 }
 0x468   : > { %3515 = vmatpush3.bf16.xpose.msra.mxu1 %v3030_v49 }
 0x46f   : > { %3517 = vmatmul.mubr.msk.bf16.vlgmr.msra.gmra.mrb[64].mxu1 %vm430_vm0, %v4923_v30 }
 0x470   : > { %3518 = vmatprep.mubr.msk.bf16.mxu1 %vm430_vm0, %v3646_v22 }
 0x477   : > { %3519 = vmatmul.mubr.msk.bf16.gmra.mrb[68].mxu1 %vm430_vm0, %v3646_v22 }
 0x542   : > { %v3090_v61 = vpop.f32.mrb[64].mxu1 }
 0x543   : > { %v3091_v40 = vadd.f32 %v3090_v61, %v2974_v26  ;;  %v3092_v10 = vpop.f32.mrb[65].mxu1 }
 0x544   : > { %v3093_v1 = vadd.f32 %v3092_v10, %v2974_v26  ;;  %v3094_v38 = vpop.f32.mrb[66].mxu1 }
 0x545   : > { %3109 = vst [vmem:[%s321_s17] sm:$0xff] %v3091_v40  ;;  %v3095_v31 = vadd.f32 %v3094_v38, %v2979_v47  ;;  %v3096_v24 = vpop.f32.mrb[67].mxu1 }
 0x546   : > { %3110 = vst [vmem:[%s321_s17 + $0x8] sm:$0xff] %v3093_v1  ;;  %v3097_v30 = vadd.f32 %v3096_v24, %v2979_v47 }
 0x547   : > { %3111 = vst [vmem:[%s321_s17 + $0x10] sm:$0xff] %v3095_v31 }
 0x548   : > { %3112 = vst [vmem:[%s321_s17 + $0x18] sm:$0xff] %v3097_v30 }
 0x54a   : > { %v3100_v9 = vpop.f32.mrb[68].mxu1 }
 0x54b   : > { %v3101_v23 = vadd.f32 %v3100_v9, %v2984_v45  ;;  %v3102_v39 = vpop.f32.mrb[69].mxu1 }
 0x54c   : > { %v3103_v20 = vadd.f32 %v3102_v39, %v2984_v45  ;;  %v3104_v34 = vpop.f32.mrb[70].mxu1 }
 0x54d   : > { %3113 = vst [vmem:[%s321_s17 + $0x20] sm:$0xff] %v3101_v23  ;;  %v3105_v33 = vadd.f32 %v3104_v34, %v2989_v43  ;;  %v3106_v32 = vpop.f32.mrb[71].mxu1 }
 0x54e   : > { %3114 = vst [vmem:[%s321_s17 + $0x28] sm:$0xff] %v3103_v20  ;;  %v3107_v7 = vadd.f32 %v3106_v32, %v2989_v43 }
 0x54f   : > { %3115 = vst [vmem:[%s321_s17 + $0x30] sm:$0xff] %v3105_v33 }
 0x550   : > { %3116 = vst [vmem:[%s321_s17 + $0x38] sm:$0xff] %v3107_v7 }
 0x551   : > { %3916 = shalt.err (!%p3913_p5)
}
 0x552   : > { %s3917_s12 = scalar_lea.hbm %s4995_s7, 1024  ;;  %s3921_s15 = scalar_lea.hbm %s5052_s5, 2048 }
 0x553   : > { %p3918_p6 = scmp.ne.s32.totalorder %s4995_s7, %s3917_s12  ;;  %p3922_p10 = scmp.lt.u32.totalorder %s4995_s7, %s5052_s5 }
 0x554   : > { %p3923_p11 = scmp.lt.u32.totalorder %s3921_s15, %s3917_s12  ;;  %p3925_p13 = scmp.lt.u32.totalorder %s3917_s12, %s4995_s7 }
 0x555   : > { %p3919_p7 = pnand %p3918_p6, %p4058_p4 }
 0x556   : > { %p3924_p12 = por %p3923_p11, %p3922_p10 }
 0x557   : > { %p3920_p9 = pneg %p3919_p7 }
 0x558   : > { %p3926_p0 = por %p3925_p13, %p3924_p12 }
 0x55a   : > { %p3927_p1 = pnand %p3926_p0, %p3920_p9 }
 0x55c   : > { %3930 = shalt.err (!%p3927_p1)
}
 0x55d   : > { %s3986_s24 = smov 256   ;;  %s3987_s27 = smov 16  }
 0x55e   : > { %3536 = dma.vmem_to_hbm [thread:$0]  (%p4058_p4), %s4997_s25, 1024, %s4995_s7, %s5001_s21, %s3986_s24, %s3986_s24, %s3987_s27  }
 0x55f PF: > { %p3542_p2 = scmp.ge.s32.totalorder %s3981_s23, 2  ;;  %s3148_s29 = sand.u32 1, %s3961_s18  }
 0x560   : > { %s3149_s8 = scalar_lea.sflag [#allocation6], %s3148_s29 }
 0x561   : > { %p3539_p3 = pnand %p3542_p2, %p4065_p8 }
 0x563   : > { %3956 = dma.done.wait (!%p3539_p3), %s3149_s8, 1024  }
 0x564   : > { %3958 = vsyncadd (!%p3539_p3), %s3149_s8, 4294966272  ;;  %s18_s23 = sadd.s32 1, %s3981_s23   ;;  %s5183_s18 = smov %s3965_s19 }
 0x565   : > { %p15_p5 = scmp.ge.s32.totalorder %s18_s23, 4   ;;  %s5184_s19 = smov %s3969_s20 }
 0x566   : > { %s5185_s20 = smov %s4071_s6  ;;  %s5186_s21 = smov %s3977_s22 }
 0x567   : > { %s5187_s22 = smov %s5189_s26  ;;  %17 = sbr.rel (!%p15_p5) target bundleno = 4 (0x4), region = 93 }
 0x56e   :  { %3154 = vsyncpa [#allocation6], 1 }
 0x56f   :  { %3156 = vsyncpa [#allocation6 + $0x1], 1 }

</bundles_post_ra>
